<compile_context>
chip_gen: v5e
topology: v5e:2x2
jax: 0.10.0
libtpu: 0.0.40
codegen_flags: <defaults>
</compile_context>

<pallas_src>
import jax
import jax.numpy as jnp
from jax.experimental import pallas as pl
from jax.experimental.pallas import tpu as pltpu

EPS = 1e-5


# ----------------------------- fused kernel ---------------------------------

def _build_block_kernel(nb, h, w, cin, planes, has_sc):
    """Returns the fused SEPreActBlock kernel body. Grid = (phase, batch)."""
    hw = h * w
    col0 = 8                                   # sublane-aligned image column offset
    inv_hw = 1.0 / float(hw)
    inv_cnt = 1.0 / float(nb * hw)

    def kernel(*refs):
        if has_sc:
            (x_ref, fc1_ref, fc2_ref, g1_ref, b1_ref, g2_ref, b2_ref,
             w1_ref, w2_ref, sc_ref, o_ref,
             s1_a, s1_b, s2_a, s2_b, se_scr, c1_scr, sc_scr, pad1, pad2) = refs
        else:
            (x_ref, fc1_ref, fc2_ref, g1_ref, b1_ref, g2_ref, b2_ref,
             w1_ref, w2_ref, o_ref,
             s1_a, s1_b, s2_a, s2_b, se_scr, c1_scr, sc_scr, pad1, pad2) = refs
            sc_ref = None

        phase = pl.program_id(0)
        b = pl.program_id(1)

        def load_x():
            return x_ref[0].reshape(hw, cin)              # this sample, (HW, Cin)

        def conv3x3(pad_ref, a_2d, chans, w_ref):
            """3x3 conv (pad=1, stride=1) as 9 shifted in-VMEM matmuls."""
            pad_ref[1:1 + h, col0:col0 + w, :] = a_2d.reshape(h, w, chans)
            acc = jnp.zeros((hw, planes), jnp.float32)
            for k in range(9):
                kh, kw = divmod(k, 3)
                win = pad_ref[kh:kh + h, col0 - 1 + kw:col0 - 1 + kw + w, :]
                acc += jnp.dot(win.reshape(hw, chans), w_ref[k],
                               preferred_element_type=jnp.float32)
            return acc

        # ---------------- phase 0: bn1 batch stats + SE vector -------------
        @pl.when(phase == 0)
        def _phase0():
            @pl.when(b == 0)
            def _():
                s1_a[...] = jnp.zeros_like(s1_a)
                s1_b[...] = jnp.zeros_like(s1_b)

            x2 = load_x()
            xsum = jnp.sum(x2, axis=0, keepdims=True)
            s1_a[...] += xsum
            s1_b[...] += jnp.sum(x2 * x2, axis=0, keepdims=True)

            pooled = xsum * inv_hw                                    # (1, Cin)
            hid = jnp.maximum(
                jnp.dot(pooled, fc1_ref[...],
                        preferred_element_type=jnp.float32), 0.0)
            se_scr[b] = jax.nn.sigmoid(
                jnp.dot(hid, fc2_ref[...],
                        preferred_element_type=jnp.float32))

            @pl.when(b == nb - 1)                 # finalize bn1 scale / bias
            def _():
                mean = s1_a[...] * inv_cnt
                var = s1_b[...] * inv_cnt - mean * mean
                scale = g1_ref[...] * jax.lax.rsqrt(var + EPS)
                s1_a[...] = scale
                s1_b[...] = b1_ref[...] - mean * scale

        # ---- phase 1: bn1+relu, conv1 (3x3), shortcut stash, bn2 stats ----
        @pl.when(phase == 1)
        def _phase1():
            @pl.when(b == 0)
            def _():
                s2_a[...] = jnp.zeros_like(s2_a)
                s2_b[...] = jnp.zeros_like(s2_b)
                pad1[...] = jnp.zeros_like(pad1)          # zero halo once

            x2 = load_x()
            a1 = jnp.maximum(x2 * s1_a[...] + s1_b[...], 0.0)      # bn1 + relu
            c1 = conv3x3(pad1, a1, cin, w1_ref)                    # (HW, planes)
            c1_scr[b] = c1
            if has_sc:
                sc_scr[b] = jnp.dot(a1, sc_ref[...],               # 1x1 shortcut
                                    preferred_element_type=jnp.float32)
            else:
                sc_scr[b] = x2                                     # identity (Cin==planes)
            s2_a[...] += jnp.sum(c1, axis=0, keepdims=True)
            s2_b[...] += jnp.sum(c1 * c1, axis=0, keepdims=True)

            @pl.when(b == nb - 1)                 # finalize bn2 scale / bias
            def _():
                mean = s2_a[...] * inv_cnt
                var = s2_b[...] * inv_cnt - mean * mean
                scale = g2_ref[...] * jax.lax.rsqrt(var + EPS)
                s2_a[...] = scale
                s2_b[...] = b2_ref[...] - mean * scale

        # ---- phase 2: bn2+relu, conv2 (3x3), SE scale, residual, store ----
        @pl.when(phase == 2)
        def _phase2():
            @pl.when(b == 0)
            def _():
                pad2[...] = jnp.zeros_like(pad2)          # zero halo once

            a2 = jnp.maximum(c1_scr[b] * s2_a[...] + s2_b[...], 0.0)   # bn2+relu
            c2 = conv3x3(pad2, a2, planes, w2_ref)                     # (HW, planes)
            out = c2 * se_scr[b] + sc_scr[b]                           # SE + residual
            o_ref[0] = out.reshape(h, w, planes).astype(o_ref.dtype)

    return kernel


# --------------------------- host-side wrappers ------------------------------

def prepare_params(params):
    """One-time weight layout prep (kept OUTSIDE the jitted forward)."""
    planes, cin = params["conv1_w"].shape[0], params["conv1_w"].shape[1]
    f32 = jnp.float32
    prep = {
        "fc1": jnp.transpose(params["fc1_w"]).astype(f32),             # (Cin, hidden)
        "fc2": jnp.transpose(params["fc2_w"]).astype(f32),             # (hidden, planes)
        "bn1_g": params["bn1_g"].reshape(1, cin).astype(f32),
        "bn1_b": params["bn1_b"].reshape(1, cin).astype(f32),
        "bn2_g": params["bn2_g"].reshape(1, planes).astype(f32),
        "bn2_b": params["bn2_b"].reshape(1, planes).astype(f32),
        # OIHW -> (kh*3+kw, I, O): each 3x3 tap becomes a lane-dense (I, O) matmul
        "w1": jnp.transpose(params["conv1_w"], (2, 3, 1, 0)).reshape(9, cin, planes).astype(f32),
        "w2": jnp.transpose(params["conv2_w"], (2, 3, 1, 0)).reshape(9, planes, planes).astype(f32),
    }
    if "sc_w" in params:
        prep["sc"] = jnp.transpose(params["sc_w"][:, :, 0, 0]).astype(f32)  # (Cin, planes)
    return prep


def se_preact_block_forward(x_nchw, prep):
    """Fused SEPreActBlock forward. x: NCHW float32 -> NCHW float32."""
    n, cin, h, w = x_nchw.shape
    planes = prep["w1"].shape[2]
    hidden = prep["fc1"].shape[1]
    has_sc = "sc" in prep
    hw = h * w
    if w % 8 != 0:
        # TODO(synk): generalize the in-VMEM 3x3 staging to W not a multiple of 8.
        raise NotImplementedError("W must be a multiple of 8")

    x_nhwc = jnp.transpose(x_nchw, (0, 2, 3, 1)).astype(jnp.float32)
    kernel = _build_block_kernel(n, h, w, cin, planes, has_sc)

    def full_spec(shape):
        nd = len(shape)
        return pl.BlockSpec(shape, lambda p, b: (0,) * nd)

    # x is only needed by phases 0 and 1; pin the block index to 0 during
    # phase 2 so the pipeline stops re-fetching it from HBM there.
    x_spec = pl.BlockSpec((1, h, w, cin),
                          lambda p, b: (jnp.where(p < 2, b, 0), 0, 0, 0))
    # The output is only produced in phase 2; pin its block index to 0 during
    # phases 0/1 so each output block is written back to HBM exactly once.
    out_spec = pl.BlockSpec((1, h, w, planes),
                            lambda p, b: (jnp.where(p == 2, b, 0), 0, 0, 0))

    in_specs = [
        x_spec,                                                        # x (per sample)
        full_spec((cin, hidden)),                                      # fc1
        full_spec((hidden, planes)),                                   # fc2
        full_spec((1, cin)), full_spec((1, cin)),                      # bn1 gamma/beta
        full_spec((1, planes)), full_spec((1, planes)),                # bn2 gamma/beta
        full_spec((9, cin, planes)),                                   # conv1 taps
        full_spec((9, planes, planes)),                                # conv2 taps
    ]
    args = [x_nhwc, prep["fc1"], prep["fc2"], prep["bn1_g"], prep["bn1_b"],
            prep["bn2_g"], prep["bn2_b"], prep["w1"], prep["w2"]]
    if has_sc:
        in_specs.append(full_spec((cin, planes)))                      # 1x1 shortcut
        args.append(prep["sc"])

    wpad = w + 16                                   # 8-column zero halo each side
    grid_spec = pltpu.PrefetchScalarGridSpec(
        num_scalar_prefetch=0,
        grid=(3, n),                                # (phase, batch); phase outermost
        in_specs=in_specs,
        out_specs=out_spec,
        scratch_shapes=[
            pltpu.VMEM((1, cin), jnp.float32),        # bn1 sum   -> scale
            pltpu.VMEM((1, cin), jnp.float32),        # bn1 sumsq -> bias
            pltpu.VMEM((1, planes), jnp.float32),     # bn2 sum   -> scale
            pltpu.VMEM((1, planes), jnp.float32),     # bn2 sumsq -> bias
            pltpu.VMEM((n, 1, planes), jnp.float32),        # SE vectors
            pltpu.VMEM((n, hw, planes), jnp.float32),       # conv1 output
            pltpu.VMEM((n, hw, planes), jnp.float32),       # shortcut stash
            pltpu.VMEM((h + 2, wpad, cin), jnp.float32),    # conv1 halo staging
            pltpu.VMEM((h + 2, wpad, planes), jnp.float32), # conv2 halo staging
        ],
    )

    flops = (2 * n * hw * 9 * planes * (cin + planes)
             + (2 * n * hw * cin * planes if has_sc else 0)
             + 2 * n * (cin * hidden + hidden * planes))
    bytes_accessed = 4 * (2 * n * hw * cin + n * hw * planes
                          + 9 * planes * (cin + planes) + cin * planes
                          + cin * hidden + hidden * planes + 2 * (cin + planes))

    out_nhwc = pl.pallas_call(
        kernel,
        out_shape=jax.ShapeDtypeStruct((n, h, w, planes), jnp.float32),
        grid_spec=grid_spec,
        compiler_params=pltpu.CompilerParams(
            # Batch axis stays "arbitrary": BN stats / SE / conv1 / shortcut
            # intermediates are carried in VMEM scratch across samples.
            dimension_semantics=("arbitrary", "arbitrary")),
        cost_estimate=pl.CostEstimate(flops=int(flops),
                                      transcendentals=int(n * planes),
                                      bytes_accessed=int(bytes_accessed)),
    )(*args)

    return jnp.transpose(out_nhwc, (0, 3, 1, 2))            # back to NCHW


# ---------------- pure-JAX reference (correctness check) --------------------

def reference_forward(x, p):
    hi = jax.lax.Precision.HIGHEST

    def bn_relu(v, g, b):
        mean = v.mean(axis=(0, 2, 3), keepdims=True)
        var = ((v - mean) ** 2).mean(axis=(0, 2, 3), keepdims=True)
        y = (v - mean) / jnp.sqrt(var + EPS) * g.reshape(1, -1, 1, 1) \
            + b.reshape(1, -1, 1, 1)
        return jnp.maximum(y, 0.0)

    def conv(v, wgt, pad):
        return jax.lax.conv_general_dilated(
            v, wgt, (1, 1), ((pad, pad), (pad, pad)),
            dimension_numbers=("NCHW", "OIHW", "NCHW"), precision=hi)

    y = x.mean(axis=(2, 3))
    hmid = jnp.maximum(jnp.dot(y, p["fc1_w"].T, precision=hi), 0.0)
    se = jax.nn.sigmoid(jnp.dot(hmid, p["fc2_w"].T, precision=hi))[:, :, None, None]

    out = bn_relu(x, p["bn1_g"], p["bn1_b"])
    if x.shape[1] != p["conv1_w"].shape[0]:
        shortcut = conv(out, p["sc_w"], 0)
    else:
        shortcut = x
    out = conv(out, p["conv1_w"], 1)
    out = conv(bn_relu(out, p["bn2_g"], p["bn2_b"]), p["conv2_w"], 1)
    return se * out + shortcut


# ----------------------------------- main ------------------------------------

if __name__ == "__main__":
    N, CIN, H, W = 2, 16, 8, 8
    PLANES, REDUCTION = 32, 16
    HIDDEN = PLANES // REDUCTION            # SELayer hidden dim

    key = jax.random.PRNGKey(0)
    ks = jax.random.split(key, 10)
    params = {
        "bn1_g": 1.0 + 0.1 * jax.random.normal(ks[0], (CIN,), jnp.float32),
        "bn1_b": 0.1 * jax.random.normal(ks[1], (CIN,), jnp.float32),
        "conv1_w": 0.1 * jax.random.normal(ks[2], (PLANES, CIN, 3, 3), jnp.float32),
        "bn2_g": 1.0 + 0.1 * jax.random.normal(ks[3], (PLANES,), jnp.float32),
        "bn2_b": 0.1 * jax.random.normal(ks[4], (PLANES,), jnp.float32),
        "conv2_w": 0.1 * jax.random.normal(ks[5], (PLANES, PLANES, 3, 3), jnp.float32),
        "fc1_w": 0.2 * jax.random.normal(ks[6], (HIDDEN, CIN), jnp.float32),
        "fc2_w": 0.2 * jax.random.normal(ks[7], (PLANES, HIDDEN), jnp.float32),
        "sc_w": 0.1 * jax.random.normal(ks[8], (PLANES, CIN, 1, 1), jnp.float32),
    }
    x = jax.random.normal(ks[9], (N, CIN, H, W), jnp.float32)

    prep = prepare_params(params)                 # weight prep once, outside jit
    fwd = jax.jit(se_preact_block_forward)
    out = jax.block_until_ready(fwd(x, prep))

    ref = jax.block_until_ready(reference_forward(x, params))
    assert out.shape == (N, PLANES, H, W), out.shape
    err = float(jnp.max(jnp.abs(out - ref)))
    if not jnp.allclose(out, ref, atol=1e-2, rtol=1e-2):
        raise AssertionError(f"mismatch vs reference, max abs err = {err}")
    print("KERNEL_OK")
</pallas_src>

<mosaic_0001>
module attributes {stable_mosaic.version = 11 : i64} {
  func.func @kernel(%arg0: i32, %arg1: i32, %arg2: memref<1x8x8x16xf32, #tpu.memory_space<vmem>>, %arg3: memref<16x2xf32, #tpu.memory_space<vmem>>, %arg4: memref<2x32xf32, #tpu.memory_space<vmem>>, %arg5: memref<1x16xf32, #tpu.memory_space<vmem>>, %arg6: memref<1x16xf32, #tpu.memory_space<vmem>>, %arg7: memref<1x32xf32, #tpu.memory_space<vmem>>, %arg8: memref<1x32xf32, #tpu.memory_space<vmem>>, %arg9: memref<9x16x32xf32, #tpu.memory_space<vmem>>, %arg10: memref<9x32x32xf32, #tpu.memory_space<vmem>>, %arg11: memref<16x32xf32, #tpu.memory_space<vmem>>, %arg12: memref<1x8x8x32xf32, #tpu.memory_space<vmem>>, %arg13: memref<1x16xf32, #tpu.memory_space<vmem>>, %arg14: memref<1x16xf32, #tpu.memory_space<vmem>>, %arg15: memref<1x32xf32, #tpu.memory_space<vmem>>, %arg16: memref<1x32xf32, #tpu.memory_space<vmem>>, %arg17: memref<2x1x32xf32, #tpu.memory_space<vmem>>, %arg18: memref<2x64x32xf32, #tpu.memory_space<vmem>>, %arg19: memref<2x64x32xf32, #tpu.memory_space<vmem>>, %arg20: memref<10x24x16xf32, #tpu.memory_space<vmem>>, %arg21: memref<10x24x32xf32, #tpu.memory_space<vmem>>) attributes {dimension_semantics = [#tpu.dimension_semantics<arbitrary>, #tpu.dimension_semantics<arbitrary>], iteration_bounds = array<i64: 3, 2>, scalar_prefetch = 0 : i64, scratch_operands = 9 : i64, tpu.core_type = #tpu.core_type<tc>, window_params = [{transform_indices = @transform_0, window_bounds = array<i64: 1, 8, 8, 16>}, {pipeline_mode = #tpu.pipeline_mode<synchronous>, transform_indices = @transform_1, window_bounds = array<i64: 16, 2>}, {pipeline_mode = #tpu.pipeline_mode<synchronous>, transform_indices = @transform_2, window_bounds = array<i64: 2, 32>}, {pipeline_mode = #tpu.pipeline_mode<synchronous>, transform_indices = @transform_3, window_bounds = array<i64: 1, 16>}, {pipeline_mode = #tpu.pipeline_mode<synchronous>, transform_indices = @transform_4, window_bounds = array<i64: 1, 16>}, {pipeline_mode = #tpu.pipeline_mode<synchronous>, transform_indices = @transform_5, window_bounds = array<i64: 1, 32>}, {pipeline_mode = #tpu.pipeline_mode<synchronous>, transform_indices = @transform_6, window_bounds = array<i64: 1, 32>}, {pipeline_mode = #tpu.pipeline_mode<synchronous>, transform_indices = @transform_7, window_bounds = array<i64: 9, 16, 32>}, {pipeline_mode = #tpu.pipeline_mode<synchronous>, transform_indices = @transform_8, window_bounds = array<i64: 9, 32, 32>}, {pipeline_mode = #tpu.pipeline_mode<synchronous>, transform_indices = @transform_9, window_bounds = array<i64: 16, 32>}, {transform_indices = @transform_10, window_bounds = array<i64: 1, 8, 8, 32>}]} {
    %c0_i32 = arith.constant 0 : i32
    %0 = arith.cmpi eq, %arg0, %c0_i32 : i32
    %1 = arith.extui %0 : i1 to i32
    %c0_i32_0 = arith.constant 0 : i32
    %2 = arith.cmpi ne, %1, %c0_i32_0 : i32
    scf.if %2 {
      %c0_i32_3 = arith.constant 0 : i32
      %9 = arith.cmpi eq, %arg1, %c0_i32_3 : i32
      %10 = arith.extui %9 : i1 to i32
      %c0_i32_4 = arith.constant 0 : i32
      %11 = arith.cmpi ne, %10, %c0_i32_4 : i32
      scf.if %11 {
        %cst_30 = arith.constant 0.000000e+00 : f32
        %46 = vector.broadcast %cst_30 : f32 to vector<1x16xf32>
        %c0_31 = arith.constant 0 : index
        %c0_32 = arith.constant 0 : index
        %47 = vector.load %arg13[%c0_31, %c0_32] : memref<1x16xf32, #tpu.memory_space<vmem>>, vector<1x16xf32>
        tpu.vector_store %arg13[%c0_31, %c0_32], %46 {strides = array<i32>} : memref<1x16xf32, #tpu.memory_space<vmem>>, vector<1x16xf32>,
        %cst_33 = arith.constant 0.000000e+00 : f32
        %48 = vector.broadcast %cst_33 : f32 to vector<1x16xf32>
        %c0_34 = arith.constant 0 : index
        %c0_35 = arith.constant 0 : index
        %49 = vector.load %arg14[%c0_34, %c0_35] : memref<1x16xf32, #tpu.memory_space<vmem>>, vector<1x16xf32>
        tpu.vector_store %arg14[%c0_34, %c0_35], %48 {strides = array<i32>} : memref<1x16xf32, #tpu.memory_space<vmem>>, vector<1x16xf32>,
      } else {
      }
      %c0 = arith.constant 0 : index
      %c0_5 = arith.constant 0 : index
      %c0_6 = arith.constant 0 : index
      %c0_7 = arith.constant 0 : index
      %12 = vector.load %arg2[%c0, %c0_5, %c0_6, %c0_7] : memref<1x8x8x16xf32, #tpu.memory_space<vmem>>, vector<1x8x8x16xf32>
      %13 = vector.shape_cast %12 : vector<1x8x8x16xf32> to vector<8x8x16xf32>
      %14 = vector.shape_cast %13 : vector<8x8x16xf32> to vector<64x16xf32>
      %cst = arith.constant dense<0.000000e+00> : vector<16xf32>
      %15 = vector.multi_reduction <add>, %14, %cst [0] : vector<64x16xf32> to vector<16xf32>
      %16 = vector.shape_cast %15 : vector<16xf32> to vector<1x16xf32>
      %c0_8 = arith.constant 0 : index
      %c0_9 = arith.constant 0 : index
      %17 = vector.load %arg13[%c0_8, %c0_9] : memref<1x16xf32, #tpu.memory_space<vmem>>, vector<1x16xf32>
      %18 = arith.addf %17, %16 : vector<1x16xf32>
      %c0_10 = arith.constant 0 : index
      %c0_11 = arith.constant 0 : index
      %19 = vector.load %arg13[%c0_10, %c0_11] : memref<1x16xf32, #tpu.memory_space<vmem>>, vector<1x16xf32>
      tpu.vector_store %arg13[%c0_10, %c0_11], %18 {strides = array<i32>} : memref<1x16xf32, #tpu.memory_space<vmem>>, vector<1x16xf32>,
      %c0_12 = arith.constant 0 : index
      %c0_13 = arith.constant 0 : index
      %20 = vector.load %arg14[%c0_12, %c0_13] : memref<1x16xf32, #tpu.memory_space<vmem>>, vector<1x16xf32>
      %21 = arith.mulf %14, %14 : vector<64x16xf32>
      %cst_14 = arith.constant dense<0.000000e+00> : vector<16xf32>
      %22 = vector.multi_reduction <add>, %21, %cst_14 [0] : vector<64x16xf32> to vector<16xf32>
      %23 = vector.shape_cast %22 : vector<16xf32> to vector<1x16xf32>
      %24 = arith.addf %20, %23 : vector<1x16xf32>
      %c0_15 = arith.constant 0 : index
      %c0_16 = arith.constant 0 : index
      %25 = vector.load %arg14[%c0_15, %c0_16] : memref<1x16xf32, #tpu.memory_space<vmem>>, vector<1x16xf32>
      tpu.vector_store %arg14[%c0_15, %c0_16], %24 {strides = array<i32>} : memref<1x16xf32, #tpu.memory_space<vmem>>, vector<1x16xf32>,
      %cst_17 = arith.constant 1.562500e-02 : f32
      %26 = vector.broadcast %cst_17 : f32 to vector<1x16xf32>
      %27 = arith.mulf %16, %26 : vector<1x16xf32>
      %c0_18 = arith.constant 0 : index
      %c0_19 = arith.constant 0 : index
      %28 = vector.load %arg3[%c0_18, %c0_19] : memref<16x2xf32, #tpu.memory_space<vmem>>, vector<16x2xf32>
      %cst_20 = arith.constant dense<0.000000e+00> : vector<1x2xf32>
      %29 = tpu.matmul %27, %28, %cst_20 {dimension_numbers = #tpu.dot_dimension_numbers<[1], [0], [0], [1], [0, 0, 1, 1], [], []>} : vector<1x16xf32>, vector<16x2xf32>, vector<1x2xf32> -> vector<1x2xf32>
      %cst_21 = arith.constant 0.000000e+00 : f32
      %30 = vector.broadcast %cst_21 : f32 to vector<1x2xf32>
      %31 = arith.maximumf %29, %30 : vector<1x2xf32>
      %c0_22 = arith.constant 0 : index
      %c0_23 = arith.constant 0 : index
      %32 = vector.load %arg4[%c0_22, %c0_23] : memref<2x32xf32, #tpu.memory_space<vmem>>, vector<2x32xf32>
      %cst_24 = arith.constant dense<0.000000e+00> : vector<1x32xf32>
      %33 = tpu.matmul %31, %32, %cst_24 {dimension_numbers = #tpu.dot_dimension_numbers<[1], [0], [0], [1], [0, 0, 1, 1], [], []>} : vector<1x2xf32>, vector<2x32xf32>, vector<1x32xf32> -> vector<1x32xf32>
      %34 = arith.negf %33 : vector<1x32xf32>
      %35 = math.exp %34 : vector<1x32xf32>
      %cst_25 = arith.constant 1.000000e+00 : f32
      %36 = vector.broadcast %cst_25 : f32 to vector<1x32xf32>
      %37 = arith.addf %36, %35 : vector<1x32xf32>
      %38 = arith.divf %36, %37 : vector<1x32xf32>
      %39 = arith.index_cast %arg1 : i32 to index
      %c0_26 = arith.constant 0 : index
      %c0_27 = arith.constant 0 : index
      %40 = vector.load %arg17[%39, %c0_26, %c0_27] : memref<2x1x32xf32, #tpu.memory_space<vmem>>, vector<1x1x32xf32>
      %41 = vector.shape_cast %40 : vector<1x1x32xf32> to vector<1x32xf32>
      %42 = vector.shape_cast %38 : vector<1x32xf32> to vector<1x1x32xf32>
      tpu.vector_store %arg17[%39, %c0_26, %c0_27], %42 {strides = array<i32>} : memref<2x1x32xf32, #tpu.memory_space<vmem>>, vector<1x1x32xf32>,
      %c1_i32_28 = arith.constant 1 : i32
      %43 = arith.cmpi eq, %arg1, %c1_i32_28 : i32
      %44 = arith.extui %43 : i1 to i32
      %c0_i32_29 = arith.constant 0 : i32
      %45 = arith.cmpi ne, %44, %c0_i32_29 : i32
      scf.if %45 {
        %c0_30 = arith.constant 0 : index
        %c0_31 = arith.constant 0 : index
        %46 = vector.load %arg13[%c0_30, %c0_31] : memref<1x16xf32, #tpu.memory_space<vmem>>, vector<1x16xf32>
        %cst_32 = arith.constant 7.812500e-03 : f32
        %47 = vector.broadcast %cst_32 : f32 to vector<1x16xf32>
        %48 = arith.mulf %46, %47 : vector<1x16xf32>
        %c0_33 = arith.constant 0 : index
        %c0_34 = arith.constant 0 : index
        %49 = vector.load %arg14[%c0_33, %c0_34] : memref<1x16xf32, #tpu.memory_space<vmem>>, vector<1x16xf32>
        %cst_35 = arith.constant 7.812500e-03 : f32
        %50 = vector.broadcast %cst_35 : f32 to vector<1x16xf32>
        %51 = arith.mulf %49, %50 : vector<1x16xf32>
        %52 = arith.mulf %48, %48 : vector<1x16xf32>
        %53 = arith.subf %51, %52 : vector<1x16xf32>
        %c0_36 = arith.constant 0 : index
        %c0_37 = arith.constant 0 : index
        %54 = vector.load %arg5[%c0_36, %c0_37] : memref<1x16xf32, #tpu.memory_space<vmem>>, vector<1x16xf32>
        %cst_38 = arith.constant 9.99999974E-6 : f32
        %55 = vector.broadcast %cst_38 : f32 to vector<1x16xf32>
        %56 = arith.addf %53, %55 : vector<1x16xf32>
        %57 = math.rsqrt %56 : vector<1x16xf32>
        %58 = arith.mulf %54, %57 : vector<1x16xf32>
        %c0_39 = arith.constant 0 : index
        %c0_40 = arith.constant 0 : index
        %59 = vector.load %arg13[%c0_39, %c0_40] : memref<1x16xf32, #tpu.memory_space<vmem>>, vector<1x16xf32>
        tpu.vector_store %arg13[%c0_39, %c0_40], %58 {strides = array<i32>} : memref<1x16xf32, #tpu.memory_space<vmem>>, vector<1x16xf32>,
        %c0_41 = arith.constant 0 : index
        %c0_42 = arith.constant 0 : index
        %60 = vector.load %arg6[%c0_41, %c0_42] : memref<1x16xf32, #tpu.memory_space<vmem>>, vector<1x16xf32>
        %61 = arith.mulf %48, %58 : vector<1x16xf32>
        %62 = arith.subf %60, %61 : vector<1x16xf32>
        %c0_43 = arith.constant 0 : index
        %c0_44 = arith.constant 0 : index
        %63 = vector.load %arg14[%c0_43, %c0_44] : memref<1x16xf32, #tpu.memory_space<vmem>>, vector<1x16xf32>
        tpu.vector_store %arg14[%c0_43, %c0_44], %62 {strides = array<i32>} : memref<1x16xf32, #tpu.memory_space<vmem>>, vector<1x16xf32>,
      } else {
      }
    } else {
    }
    %c1_i32 = arith.constant 1 : i32
    %3 = arith.cmpi eq, %arg0, %c1_i32 : i32
    %4 = arith.extui %3 : i1 to i32
    %c0_i32_1 = arith.constant 0 : i32
    %5 = arith.cmpi ne, %4, %c0_i32_1 : i32
    scf.if %5 {
      %c0_i32_3 = arith.constant 0 : i32
      %9 = arith.cmpi eq, %arg1, %c0_i32_3 : i32
      %10 = arith.extui %9 : i1 to i32
      %c0_i32_4 = arith.constant 0 : i32
      %11 = arith.cmpi ne, %10, %c0_i32_4 : i32
      scf.if %11 {
        %cst_89 = arith.constant 0.000000e+00 : f32
        %104 = vector.broadcast %cst_89 : f32 to vector<1x32xf32>
        %c0_90 = arith.constant 0 : index
        %c0_91 = arith.constant 0 : index
        %105 = vector.load %arg15[%c0_90, %c0_91] : memref<1x32xf32, #tpu.memory_space<vmem>>, vector<1x32xf32>
        tpu.vector_store %arg15[%c0_90, %c0_91], %104 {strides = array<i32>} : memref<1x32xf32, #tpu.memory_space<vmem>>, vector<1x32xf32>,
        %cst_92 = arith.constant 0.000000e+00 : f32
        %106 = vector.broadcast %cst_92 : f32 to vector<1x32xf32>
        %c0_93 = arith.constant 0 : index
        %c0_94 = arith.constant 0 : index
        %107 = vector.load %arg16[%c0_93, %c0_94] : memref<1x32xf32, #tpu.memory_space<vmem>>, vector<1x32xf32>
        tpu.vector_store %arg16[%c0_93, %c0_94], %106 {strides = array<i32>} : memref<1x32xf32, #tpu.memory_space<vmem>>, vector<1x32xf32>,
        %cst_95 = arith.constant 0.000000e+00 : f32
        %108 = vector.broadcast %cst_95 : f32 to vector<10x24x16xf32>
        %c0_96 = arith.constant 0 : index
        %c0_97 = arith.constant 0 : index
        %c0_98 = arith.constant 0 : index
        %109 = vector.load %arg20[%c0_96, %c0_97, %c0_98] : memref<10x24x16xf32, #tpu.memory_space<vmem>>, vector<10x24x16xf32>
        tpu.vector_store %arg20[%c0_96, %c0_97, %c0_98], %108 {strides = array<i32>} : memref<10x24x16xf32, #tpu.memory_space<vmem>>, vector<10x24x16xf32>,
      } else {
      }
      %c0 = arith.constant 0 : index
      %c0_5 = arith.constant 0 : index
      %c0_6 = arith.constant 0 : index
      %c0_7 = arith.constant 0 : index
      %12 = vector.load %arg2[%c0, %c0_5, %c0_6, %c0_7] : memref<1x8x8x16xf32, #tpu.memory_space<vmem>>, vector<1x8x8x16xf32>
      %13 = vector.shape_cast %12 : vector<1x8x8x16xf32> to vector<8x8x16xf32>
      %14 = vector.shape_cast %13 : vector<8x8x16xf32> to vector<64x16xf32>
      %c0_8 = arith.constant 0 : index
      %c0_9 = arith.constant 0 : index
      %15 = vector.load %arg13[%c0_8, %c0_9] : memref<1x16xf32, #tpu.memory_space<vmem>>, vector<1x16xf32>
      %16 = vector.broadcast %15 : vector<1x16xf32> to vector<64x16xf32>
      %17 = arith.mulf %14, %16 : vector<64x16xf32>
      %c0_10 = arith.constant 0 : index
      %c0_11 = arith.constant 0 : index
      %18 = vector.load %arg14[%c0_10, %c0_11] : memref<1x16xf32, #tpu.memory_space<vmem>>, vector<1x16xf32>
      %19 = vector.broadcast %18 : vector<1x16xf32> to vector<64x16xf32>
      %20 = arith.addf %17, %19 : vector<64x16xf32>
      %cst = arith.constant 0.000000e+00 : f32
      %21 = vector.broadcast %cst : f32 to vector<64x16xf32>
      %22 = arith.maximumf %20, %21 : vector<64x16xf32>
      %23 = vector.shape_cast %22 : vector<64x16xf32> to vector<8x8x16xf32>
      %c1 = arith.constant 1 : index
      %c8 = arith.constant 8 : index
      %c0_12 = arith.constant 0 : index
      %24 = vector.load %arg20[%c1, %c8, %c0_12] : memref<10x24x16xf32, #tpu.memory_space<vmem>>, vector<8x8x16xf32>
      tpu.vector_store %arg20[%c1, %c8, %c0_12], %23 {strides = array<i32>} : memref<10x24x16xf32, #tpu.memory_space<vmem>>, vector<8x8x16xf32>,
      %cst_13 = arith.constant 0.000000e+00 : f32
      %25 = vector.broadcast %cst_13 : f32 to vector<64x32xf32>
      %c0_14 = arith.constant 0 : index
      %c7 = arith.constant 7 : index
      %c0_15 = arith.constant 0 : index
      %26 = vector.load %arg20[%c0_14, %c7, %c0_15] : memref<10x24x16xf32, #tpu.memory_space<vmem>>, vector<8x8x16xf32>
      %27 = vector.shape_cast %26 : vector<8x8x16xf32> to vector<64x16xf32>
      %c0_16 = arith.constant 0 : index
      %c0_17 = arith.constant 0 : index
      %c0_18 = arith.constant 0 : index
      %28 = vector.load %arg9[%c0_16, %c0_17, %c0_18] : memref<9x16x32xf32, #tpu.memory_space<vmem>>, vector<1x16x32xf32>
      %29 = vector.shape_cast %28 : vector<1x16x32xf32> to vector<16x32xf32>
      %cst_19 = arith.constant dense<0.000000e+00> : vector<64x32xf32>
      %30 = tpu.matmul %27, %29, %cst_19 {dimension_numbers = #tpu.dot_dimension_numbers<[1], [0], [0], [1], [0, 0, 1, 1], [], []>} : vector<64x16xf32>, vector<16x32xf32>, vector<64x32xf32> -> vector<64x32xf32>
      %31 = arith.addf %25, %30 : vector<64x32xf32>
      %c0_20 = arith.constant 0 : index
      %c8_21 = arith.constant 8 : index
      %c0_22 = arith.constant 0 : index
      %32 = vector.load %arg20[%c0_20, %c8_21, %c0_22] : memref<10x24x16xf32, #tpu.memory_space<vmem>>, vector<8x8x16xf32>
      %33 = vector.shape_cast %32 : vector<8x8x16xf32> to vector<64x16xf32>
      %c1_23 = arith.constant 1 : index
      %c0_24 = arith.constant 0 : index
      %c0_25 = arith.constant 0 : index
      %34 = vector.load %arg9[%c1_23, %c0_24, %c0_25] : memref<9x16x32xf32, #tpu.memory_space<vmem>>, vector<1x16x32xf32>
      %35 = vector.shape_cast %34 : vector<1x16x32xf32> to vector<16x32xf32>
      %cst_26 = arith.constant dense<0.000000e+00> : vector<64x32xf32>
      %36 = tpu.matmul %33, %35, %cst_26 {dimension_numbers = #tpu.dot_dimension_numbers<[1], [0], [0], [1], [0, 0, 1, 1], [], []>} : vector<64x16xf32>, vector<16x32xf32>, vector<64x32xf32> -> vector<64x32xf32>
      %37 = arith.addf %31, %36 : vector<64x32xf32>
      %c0_27 = arith.constant 0 : index
      %c9 = arith.constant 9 : index
      %c0_28 = arith.constant 0 : index
      %38 = vector.load %arg20[%c0_27, %c9, %c0_28] : memref<10x24x16xf32, #tpu.memory_space<vmem>>, vector<8x8x16xf32>
      %39 = vector.shape_cast %38 : vector<8x8x16xf32> to vector<64x16xf32>
      %c2 = arith.constant 2 : index
      %c0_29 = arith.constant 0 : index
      %c0_30 = arith.constant 0 : index
      %40 = vector.load %arg9[%c2, %c0_29, %c0_30] : memref<9x16x32xf32, #tpu.memory_space<vmem>>, vector<1x16x32xf32>
      %41 = vector.shape_cast %40 : vector<1x16x32xf32> to vector<16x32xf32>
      %cst_31 = arith.constant dense<0.000000e+00> : vector<64x32xf32>
      %42 = tpu.matmul %39, %41, %cst_31 {dimension_numbers = #tpu.dot_dimension_numbers<[1], [0], [0], [1], [0, 0, 1, 1], [], []>} : vector<64x16xf32>, vector<16x32xf32>, vector<64x32xf32> -> vector<64x32xf32>
      %43 = arith.addf %37, %42 : vector<64x32xf32>
      %c1_32 = arith.constant 1 : index
      %c7_33 = arith.constant 7 : index
      %c0_34 = arith.constant 0 : index
      %44 = vector.load %arg20[%c1_32, %c7_33, %c0_34] : memref<10x24x16xf32, #tpu.memory_space<vmem>>, vector<8x8x16xf32>
      %45 = vector.shape_cast %44 : vector<8x8x16xf32> to vector<64x16xf32>
      %c3 = arith.constant 3 : index
      %c0_35 = arith.constant 0 : index
      %c0_36 = arith.constant 0 : index
      %46 = vector.load %arg9[%c3, %c0_35, %c0_36] : memref<9x16x32xf32, #tpu.memory_space<vmem>>, vector<1x16x32xf32>
      %47 = vector.shape_cast %46 : vector<1x16x32xf32> to vector<16x32xf32>
      %cst_37 = arith.constant dense<0.000000e+00> : vector<64x32xf32>
      %48 = tpu.matmul %45, %47, %cst_37 {dimension_numbers = #tpu.dot_dimension_numbers<[1], [0], [0], [1], [0, 0, 1, 1], [], []>} : vector<64x16xf32>, vector<16x32xf32>, vector<64x32xf32> -> vector<64x32xf32>
      %49 = arith.addf %43, %48 : vector<64x32xf32>
      %c1_38 = arith.constant 1 : index
      %c8_39 = arith.constant 8 : index
      %c0_40 = arith.constant 0 : index
      %50 = vector.load %arg20[%c1_38, %c8_39, %c0_40] : memref<10x24x16xf32, #tpu.memory_space<vmem>>, vector<8x8x16xf32>
      %51 = vector.shape_cast %50 : vector<8x8x16xf32> to vector<64x16xf32>
      %c4 = arith.constant 4 : index
      %c0_41 = arith.constant 0 : index
      %c0_42 = arith.constant 0 : index
      %52 = vector.load %arg9[%c4, %c0_41, %c0_42] : memref<9x16x32xf32, #tpu.memory_space<vmem>>, vector<1x16x32xf32>
      %53 = vector.shape_cast %52 : vector<1x16x32xf32> to vector<16x32xf32>
      %cst_43 = arith.constant dense<0.000000e+00> : vector<64x32xf32>
      %54 = tpu.matmul %51, %53, %cst_43 {dimension_numbers = #tpu.dot_dimension_numbers<[1], [0], [0], [1], [0, 0, 1, 1], [], []>} : vector<64x16xf32>, vector<16x32xf32>, vector<64x32xf32> -> vector<64x32xf32>
      %55 = arith.addf %49, %54 : vector<64x32xf32>
      %c1_44 = arith.constant 1 : index
      %c9_45 = arith.constant 9 : index
      %c0_46 = arith.constant 0 : index
      %56 = vector.load %arg20[%c1_44, %c9_45, %c0_46] : memref<10x24x16xf32, #tpu.memory_space<vmem>>, vector<8x8x16xf32>
      %57 = vector.shape_cast %56 : vector<8x8x16xf32> to vector<64x16xf32>
      %c5 = arith.constant 5 : index
      %c0_47 = arith.constant 0 : index
      %c0_48 = arith.constant 0 : index
      %58 = vector.load %arg9[%c5, %c0_47, %c0_48] : memref<9x16x32xf32, #tpu.memory_space<vmem>>, vector<1x16x32xf32>
      %59 = vector.shape_cast %58 : vector<1x16x32xf32> to vector<16x32xf32>
      %cst_49 = arith.constant dense<0.000000e+00> : vector<64x32xf32>
      %60 = tpu.matmul %57, %59, %cst_49 {dimension_numbers = #tpu.dot_dimension_numbers<[1], [0], [0], [1], [0, 0, 1, 1], [], []>} : vector<64x16xf32>, vector<16x32xf32>, vector<64x32xf32> -> vector<64x32xf32>
      %61 = arith.addf %55, %60 : vector<64x32xf32>
      %c2_50 = arith.constant 2 : index
      %c7_51 = arith.constant 7 : index
      %c0_52 = arith.constant 0 : index
      %62 = vector.load %arg20[%c2_50, %c7_51, %c0_52] : memref<10x24x16xf32, #tpu.memory_space<vmem>>, vector<8x8x16xf32>
      %63 = vector.shape_cast %62 : vector<8x8x16xf32> to vector<64x16xf32>
      %c6 = arith.constant 6 : index
      %c0_53 = arith.constant 0 : index
      %c0_54 = arith.constant 0 : index
      %64 = vector.load %arg9[%c6, %c0_53, %c0_54] : memref<9x16x32xf32, #tpu.memory_space<vmem>>, vector<1x16x32xf32>
      %65 = vector.shape_cast %64 : vector<1x16x32xf32> to vector<16x32xf32>
      %cst_55 = arith.constant dense<0.000000e+00> : vector<64x32xf32>
      %66 = tpu.matmul %63, %65, %cst_55 {dimension_numbers = #tpu.dot_dimension_numbers<[1], [0], [0], [1], [0, 0, 1, 1], [], []>} : vector<64x16xf32>, vector<16x32xf32>, vector<64x32xf32> -> vector<64x32xf32>
      %67 = arith.addf %61, %66 : vector<64x32xf32>
      %c2_56 = arith.constant 2 : index
      %c8_57 = arith.constant 8 : index
      %c0_58 = arith.constant 0 : index
      %68 = vector.load %arg20[%c2_56, %c8_57, %c0_58] : memref<10x24x16xf32, #tpu.memory_space<vmem>>, vector<8x8x16xf32>
      %69 = vector.shape_cast %68 : vector<8x8x16xf32> to vector<64x16xf32>
      %c7_59 = arith.constant 7 : index
      %c0_60 = arith.constant 0 : index
      %c0_61 = arith.constant 0 : index
      %70 = vector.load %arg9[%c7_59, %c0_60, %c0_61] : memref<9x16x32xf32, #tpu.memory_space<vmem>>, vector<1x16x32xf32>
      %71 = vector.shape_cast %70 : vector<1x16x32xf32> to vector<16x32xf32>
      %cst_62 = arith.constant dense<0.000000e+00> : vector<64x32xf32>
      %72 = tpu.matmul %69, %71, %cst_62 {dimension_numbers = #tpu.dot_dimension_numbers<[1], [0], [0], [1], [0, 0, 1, 1], [], []>} : vector<64x16xf32>, vector<16x32xf32>, vector<64x32xf32> -> vector<64x32xf32>
      %73 = arith.addf %67, %72 : vector<64x32xf32>
      %c2_63 = arith.constant 2 : index
      %c9_64 = arith.constant 9 : index
      %c0_65 = arith.constant 0 : index
      %74 = vector.load %arg20[%c2_63, %c9_64, %c0_65] : memref<10x24x16xf32, #tpu.memory_space<vmem>>, vector<8x8x16xf32>
      %75 = vector.shape_cast %74 : vector<8x8x16xf32> to vector<64x16xf32>
      %c8_66 = arith.constant 8 : index
      %c0_67 = arith.constant 0 : index
      %c0_68 = arith.constant 0 : index
      %76 = vector.load %arg9[%c8_66, %c0_67, %c0_68] : memref<9x16x32xf32, #tpu.memory_space<vmem>>, vector<1x16x32xf32>
      %77 = vector.shape_cast %76 : vector<1x16x32xf32> to vector<16x32xf32>
      %cst_69 = arith.constant dense<0.000000e+00> : vector<64x32xf32>
      %78 = tpu.matmul %75, %77, %cst_69 {dimension_numbers = #tpu.dot_dimension_numbers<[1], [0], [0], [1], [0, 0, 1, 1], [], []>} : vector<64x16xf32>, vector<16x32xf32>, vector<64x32xf32> -> vector<64x32xf32>
      %79 = arith.addf %73, %78 : vector<64x32xf32>
      %80 = arith.index_cast %arg1 : i32 to index
      %c0_70 = arith.constant 0 : index
      %c0_71 = arith.constant 0 : index
      %81 = vector.load %arg18[%80, %c0_70, %c0_71] : memref<2x64x32xf32, #tpu.memory_space<vmem>>, vector<1x64x32xf32>
      %82 = vector.shape_cast %81 : vector<1x64x32xf32> to vector<64x32xf32>
      %83 = vector.shape_cast %79 : vector<64x32xf32> to vector<1x64x32xf32>
      tpu.vector_store %arg18[%80, %c0_70, %c0_71], %83 {strides = array<i32>} : memref<2x64x32xf32, #tpu.memory_space<vmem>>, vector<1x64x32xf32>,
      %c0_72 = arith.constant 0 : index
      %c0_73 = arith.constant 0 : index
      %84 = vector.load %arg11[%c0_72, %c0_73] : memref<16x32xf32, #tpu.memory_space<vmem>>, vector<16x32xf32>
      %cst_74 = arith.constant dense<0.000000e+00> : vector<64x32xf32>
      %85 = tpu.matmul %22, %84, %cst_74 {dimension_numbers = #tpu.dot_dimension_numbers<[1], [0], [0], [1], [0, 0, 1, 1], [], []>} : vector<64x16xf32>, vector<16x32xf32>, vector<64x32xf32> -> vector<64x32xf32>
      %86 = arith.index_cast %arg1 : i32 to index
      %c0_75 = arith.constant 0 : index
      %c0_76 = arith.constant 0 : index
      %87 = vector.load %arg19[%86, %c0_75, %c0_76] : memref<2x64x32xf32, #tpu.memory_space<vmem>>, vector<1x64x32xf32>
      %88 = vector.shape_cast %87 : vector<1x64x32xf32> to vector<64x32xf32>
      %89 = vector.shape_cast %85 : vector<64x32xf32> to vector<1x64x32xf32>
      tpu.vector_store %arg19[%86, %c0_75, %c0_76], %89 {strides = array<i32>} : memref<2x64x32xf32, #tpu.memory_space<vmem>>, vector<1x64x32xf32>,
      %c0_77 = arith.constant 0 : index
      %c0_78 = arith.constant 0 : index
      %90 = vector.load %arg15[%c0_77, %c0_78] : memref<1x32xf32, #tpu.memory_space<vmem>>, vector<1x32xf32>
      %cst_79 = arith.constant dense<0.000000e+00> : vector<32xf32>
      %91 = vector.multi_reduction <add>, %79, %cst_79 [0] : vector<64x32xf32> to vector<32xf32>
      %92 = vector.shape_cast %91 : vector<32xf32> to vector<1x32xf32>
      %93 = arith.addf %90, %92 : vector<1x32xf32>
      %c0_80 = arith.constant 0 : index
      %c0_81 = arith.constant 0 : index
      %94 = vector.load %arg15[%c0_80, %c0_81] : memref<1x32xf32, #tpu.memory_space<vmem>>, vector<1x32xf32>
      tpu.vector_store %arg15[%c0_80, %c0_81], %93 {strides = array<i32>} : memref<1x32xf32, #tpu.memory_space<vmem>>, vector<1x32xf32>,
      %c0_82 = arith.constant 0 : index
      %c0_83 = arith.constant 0 : index
      %95 = vector.load %arg16[%c0_82, %c0_83] : memref<1x32xf32, #tpu.memory_space<vmem>>, vector<1x32xf32>
      %96 = arith.mulf %79, %79 : vector<64x32xf32>
      %cst_84 = arith.constant dense<0.000000e+00> : vector<32xf32>
      %97 = vector.multi_reduction <add>, %96, %cst_84 [0] : vector<64x32xf32> to vector<32xf32>
      %98 = vector.shape_cast %97 : vector<32xf32> to vector<1x32xf32>
      %99 = arith.addf %95, %98 : vector<1x32xf32>
      %c0_85 = arith.constant 0 : index
      %c0_86 = arith.constant 0 : index
      %100 = vector.load %arg16[%c0_85, %c0_86] : memref<1x32xf32, #tpu.memory_space<vmem>>, vector<1x32xf32>
      tpu.vector_store %arg16[%c0_85, %c0_86], %99 {strides = array<i32>} : memref<1x32xf32, #tpu.memory_space<vmem>>, vector<1x32xf32>,
      %c1_i32_87 = arith.constant 1 : i32
      %101 = arith.cmpi eq, %arg1, %c1_i32_87 : i32
      %102 = arith.extui %101 : i1 to i32
      %c0_i32_88 = arith.constant 0 : i32
      %103 = arith.cmpi ne, %102, %c0_i32_88 : i32
      scf.if %103 {
        %c0_89 = arith.constant 0 : index
        %c0_90 = arith.constant 0 : index
        %104 = vector.load %arg15[%c0_89, %c0_90] : memref<1x32xf32, #tpu.memory_space<vmem>>, vector<1x32xf32>
        %cst_91 = arith.constant 7.812500e-03 : f32
        %105 = vector.broadcast %cst_91 : f32 to vector<1x32xf32>
        %106 = arith.mulf %104, %105 : vector<1x32xf32>
        %c0_92 = arith.constant 0 : index
        %c0_93 = arith.constant 0 : index
        %107 = vector.load %arg16[%c0_92, %c0_93] : memref<1x32xf32, #tpu.memory_space<vmem>>, vector<1x32xf32>
        %cst_94 = arith.constant 7.812500e-03 : f32
        %108 = vector.broadcast %cst_94 : f32 to vector<1x32xf32>
        %109 = arith.mulf %107, %108 : vector<1x32xf32>
        %110 = arith.mulf %106, %106 : vector<1x32xf32>
        %111 = arith.subf %109, %110 : vector<1x32xf32>
        %c0_95 = arith.constant 0 : index
        %c0_96 = arith.constant 0 : index
        %112 = vector.load %arg7[%c0_95, %c0_96] : memref<1x32xf32, #tpu.memory_space<vmem>>, vector<1x32xf32>
        %cst_97 = arith.constant 9.99999974E-6 : f32
        %113 = vector.broadcast %cst_97 : f32 to vector<1x32xf32>
        %114 = arith.addf %111, %113 : vector<1x32xf32>
        %115 = math.rsqrt %114 : vector<1x32xf32>
        %116 = arith.mulf %112, %115 : vector<1x32xf32>
        %c0_98 = arith.constant 0 : index
        %c0_99 = arith.constant 0 : index
        %117 = vector.load %arg15[%c0_98, %c0_99] : memref<1x32xf32, #tpu.memory_space<vmem>>, vector<1x32xf32>
        tpu.vector_store %arg15[%c0_98, %c0_99], %116 {strides = array<i32>} : memref<1x32xf32, #tpu.memory_space<vmem>>, vector<1x32xf32>,
        %c0_100 = arith.constant 0 : index
        %c0_101 = arith.constant 0 : index
        %118 = vector.load %arg8[%c0_100, %c0_101] : memref<1x32xf32, #tpu.memory_space<vmem>>, vector<1x32xf32>
        %119 = arith.mulf %106, %116 : vector<1x32xf32>
        %120 = arith.subf %118, %119 : vector<1x32xf32>
        %c0_102 = arith.constant 0 : index
        %c0_103 = arith.constant 0 : index
        %121 = vector.load %arg16[%c0_102, %c0_103] : memref<1x32xf32, #tpu.memory_space<vmem>>, vector<1x32xf32>
        tpu.vector_store %arg16[%c0_102, %c0_103], %120 {strides = array<i32>} : memref<1x32xf32, #tpu.memory_space<vmem>>, vector<1x32xf32>,
      } else {
      }
    } else {
    }
    %c2_i32 = arith.constant 2 : i32
    %6 = arith.cmpi eq, %arg0, %c2_i32 : i32
    %7 = arith.extui %6 : i1 to i32
    %c0_i32_2 = arith.constant 0 : i32
    %8 = arith.cmpi ne, %7, %c0_i32_2 : i32
    scf.if %8 {
      %c0_i32_3 = arith.constant 0 : i32
      %9 = arith.cmpi eq, %arg1, %c0_i32_3 : i32
      %10 = arith.extui %9 : i1 to i32
      %c0_i32_4 = arith.constant 0 : i32
      %11 = arith.cmpi ne, %10, %c0_i32_4 : i32
      scf.if %11 {
        %cst_76 = arith.constant 0.000000e+00 : f32
        %93 = vector.broadcast %cst_76 : f32 to vector<10x24x32xf32>
        %c0_77 = arith.constant 0 : index
        %c0_78 = arith.constant 0 : index
        %c0_79 = arith.constant 0 : index
        %94 = vector.load %arg21[%c0_77, %c0_78, %c0_79] : memref<10x24x32xf32, #tpu.memory_space<vmem>>, vector<10x24x32xf32>
        tpu.vector_store %arg21[%c0_77, %c0_78, %c0_79], %93 {strides = array<i32>} : memref<10x24x32xf32, #tpu.memory_space<vmem>>, vector<10x24x32xf32>,
      } else {
      }
      %12 = arith.index_cast %arg1 : i32 to index
      %c0 = arith.constant 0 : index
      %c0_5 = arith.constant 0 : index
      %13 = vector.load %arg18[%12, %c0, %c0_5] : memref<2x64x32xf32, #tpu.memory_space<vmem>>, vector<1x64x32xf32>
      %14 = vector.shape_cast %13 : vector<1x64x32xf32> to vector<64x32xf32>
      %c0_6 = arith.constant 0 : index
      %c0_7 = arith.constant 0 : index
      %15 = vector.load %arg15[%c0_6, %c0_7] : memref<1x32xf32, #tpu.memory_space<vmem>>, vector<1x32xf32>
      %16 = vector.broadcast %15 : vector<1x32xf32> to vector<64x32xf32>
      %17 = arith.mulf %14, %16 : vector<64x32xf32>
      %c0_8 = arith.constant 0 : index
      %c0_9 = arith.constant 0 : index
      %18 = vector.load %arg16[%c0_8, %c0_9] : memref<1x32xf32, #tpu.memory_space<vmem>>, vector<1x32xf32>
      %19 = vector.broadcast %18 : vector<1x32xf32> to vector<64x32xf32>
      %20 = arith.addf %17, %19 : vector<64x32xf32>
      %cst = arith.constant 0.000000e+00 : f32
      %21 = vector.broadcast %cst : f32 to vector<64x32xf32>
      %22 = arith.maximumf %20, %21 : vector<64x32xf32>
      %23 = vector.shape_cast %22 : vector<64x32xf32> to vector<8x8x32xf32>
      %c1 = arith.constant 1 : index
      %c8 = arith.constant 8 : index
      %c0_10 = arith.constant 0 : index
      %24 = vector.load %arg21[%c1, %c8, %c0_10] : memref<10x24x32xf32, #tpu.memory_space<vmem>>, vector<8x8x32xf32>
      tpu.vector_store %arg21[%c1, %c8, %c0_10], %23 {strides = array<i32>} : memref<10x24x32xf32, #tpu.memory_space<vmem>>, vector<8x8x32xf32>,
      %cst_11 = arith.constant 0.000000e+00 : f32
      %25 = vector.broadcast %cst_11 : f32 to vector<64x32xf32>
      %c0_12 = arith.constant 0 : index
      %c7 = arith.constant 7 : index
      %c0_13 = arith.constant 0 : index
      %26 = vector.load %arg21[%c0_12, %c7, %c0_13] : memref<10x24x32xf32, #tpu.memory_space<vmem>>, vector<8x8x32xf32>
      %27 = vector.shape_cast %26 : vector<8x8x32xf32> to vector<64x32xf32>
      %c0_14 = arith.constant 0 : index
      %c0_15 = arith.constant 0 : index
      %c0_16 = arith.constant 0 : index
      %28 = vector.load %arg10[%c0_14, %c0_15, %c0_16] : memref<9x32x32xf32, #tpu.memory_space<vmem>>, vector<1x32x32xf32>
      %29 = vector.shape_cast %28 : vector<1x32x32xf32> to vector<32x32xf32>
      %cst_17 = arith.constant dense<0.000000e+00> : vector<64x32xf32>
      %30 = tpu.matmul %27, %29, %cst_17 {dimension_numbers = #tpu.dot_dimension_numbers<[1], [0], [0], [1], [0, 0, 1, 1], [], []>} : vector<64x32xf32>, vector<32x32xf32>, vector<64x32xf32> -> vector<64x32xf32>
      %31 = arith.addf %25, %30 : vector<64x32xf32>
      %c0_18 = arith.constant 0 : index
      %c8_19 = arith.constant 8 : index
      %c0_20 = arith.constant 0 : index
      %32 = vector.load %arg21[%c0_18, %c8_19, %c0_20] : memref<10x24x32xf32, #tpu.memory_space<vmem>>, vector<8x8x32xf32>
      %33 = vector.shape_cast %32 : vector<8x8x32xf32> to vector<64x32xf32>
      %c1_21 = arith.constant 1 : index
      %c0_22 = arith.constant 0 : index
      %c0_23 = arith.constant 0 : index
      %34 = vector.load %arg10[%c1_21, %c0_22, %c0_23] : memref<9x32x32xf32, #tpu.memory_space<vmem>>, vector<1x32x32xf32>
      %35 = vector.shape_cast %34 : vector<1x32x32xf32> to vector<32x32xf32>
      %cst_24 = arith.constant dense<0.000000e+00> : vector<64x32xf32>
      %36 = tpu.matmul %33, %35, %cst_24 {dimension_numbers = #tpu.dot_dimension_numbers<[1], [0], [0], [1], [0, 0, 1, 1], [], []>} : vector<64x32xf32>, vector<32x32xf32>, vector<64x32xf32> -> vector<64x32xf32>
      %37 = arith.addf %31, %36 : vector<64x32xf32>
      %c0_25 = arith.constant 0 : index
      %c9 = arith.constant 9 : index
      %c0_26 = arith.constant 0 : index
      %38 = vector.load %arg21[%c0_25, %c9, %c0_26] : memref<10x24x32xf32, #tpu.memory_space<vmem>>, vector<8x8x32xf32>
      %39 = vector.shape_cast %38 : vector<8x8x32xf32> to vector<64x32xf32>
      %c2 = arith.constant 2 : index
      %c0_27 = arith.constant 0 : index
      %c0_28 = arith.constant 0 : index
      %40 = vector.load %arg10[%c2, %c0_27, %c0_28] : memref<9x32x32xf32, #tpu.memory_space<vmem>>, vector<1x32x32xf32>
      %41 = vector.shape_cast %40 : vector<1x32x32xf32> to vector<32x32xf32>
      %cst_29 = arith.constant dense<0.000000e+00> : vector<64x32xf32>
      %42 = tpu.matmul %39, %41, %cst_29 {dimension_numbers = #tpu.dot_dimension_numbers<[1], [0], [0], [1], [0, 0, 1, 1], [], []>} : vector<64x32xf32>, vector<32x32xf32>, vector<64x32xf32> -> vector<64x32xf32>
      %43 = arith.addf %37, %42 : vector<64x32xf32>
      %c1_30 = arith.constant 1 : index
      %c7_31 = arith.constant 7 : index
      %c0_32 = arith.constant 0 : index
      %44 = vector.load %arg21[%c1_30, %c7_31, %c0_32] : memref<10x24x32xf32, #tpu.memory_space<vmem>>, vector<8x8x32xf32>
      %45 = vector.shape_cast %44 : vector<8x8x32xf32> to vector<64x32xf32>
      %c3 = arith.constant 3 : index
      %c0_33 = arith.constant 0 : index
      %c0_34 = arith.constant 0 : index
      %46 = vector.load %arg10[%c3, %c0_33, %c0_34] : memref<9x32x32xf32, #tpu.memory_space<vmem>>, vector<1x32x32xf32>
      %47 = vector.shape_cast %46 : vector<1x32x32xf32> to vector<32x32xf32>
      %cst_35 = arith.constant dense<0.000000e+00> : vector<64x32xf32>
      %48 = tpu.matmul %45, %47, %cst_35 {dimension_numbers = #tpu.dot_dimension_numbers<[1], [0], [0], [1], [0, 0, 1, 1], [], []>} : vector<64x32xf32>, vector<32x32xf32>, vector<64x32xf32> -> vector<64x32xf32>
      %49 = arith.addf %43, %48 : vector<64x32xf32>
      %c1_36 = arith.constant 1 : index
      %c8_37 = arith.constant 8 : index
      %c0_38 = arith.constant 0 : index
      %50 = vector.load %arg21[%c1_36, %c8_37, %c0_38] : memref<10x24x32xf32, #tpu.memory_space<vmem>>, vector<8x8x32xf32>
      %51 = vector.shape_cast %50 : vector<8x8x32xf32> to vector<64x32xf32>
      %c4 = arith.constant 4 : index
      %c0_39 = arith.constant 0 : index
      %c0_40 = arith.constant 0 : index
      %52 = vector.load %arg10[%c4, %c0_39, %c0_40] : memref<9x32x32xf32, #tpu.memory_space<vmem>>, vector<1x32x32xf32>
      %53 = vector.shape_cast %52 : vector<1x32x32xf32> to vector<32x32xf32>
      %cst_41 = arith.constant dense<0.000000e+00> : vector<64x32xf32>
      %54 = tpu.matmul %51, %53, %cst_41 {dimension_numbers = #tpu.dot_dimension_numbers<[1], [0], [0], [1], [0, 0, 1, 1], [], []>} : vector<64x32xf32>, vector<32x32xf32>, vector<64x32xf32> -> vector<64x32xf32>
      %55 = arith.addf %49, %54 : vector<64x32xf32>
      %c1_42 = arith.constant 1 : index
      %c9_43 = arith.constant 9 : index
      %c0_44 = arith.constant 0 : index
      %56 = vector.load %arg21[%c1_42, %c9_43, %c0_44] : memref<10x24x32xf32, #tpu.memory_space<vmem>>, vector<8x8x32xf32>
      %57 = vector.shape_cast %56 : vector<8x8x32xf32> to vector<64x32xf32>
      %c5 = arith.constant 5 : index
      %c0_45 = arith.constant 0 : index
      %c0_46 = arith.constant 0 : index
      %58 = vector.load %arg10[%c5, %c0_45, %c0_46] : memref<9x32x32xf32, #tpu.memory_space<vmem>>, vector<1x32x32xf32>
      %59 = vector.shape_cast %58 : vector<1x32x32xf32> to vector<32x32xf32>
      %cst_47 = arith.constant dense<0.000000e+00> : vector<64x32xf32>
      %60 = tpu.matmul %57, %59, %cst_47 {dimension_numbers = #tpu.dot_dimension_numbers<[1], [0], [0], [1], [0, 0, 1, 1], [], []>} : vector<64x32xf32>, vector<32x32xf32>, vector<64x32xf32> -> vector<64x32xf32>
      %61 = arith.addf %55, %60 : vector<64x32xf32>
      %c2_48 = arith.constant 2 : index
      %c7_49 = arith.constant 7 : index
      %c0_50 = arith.constant 0 : index
      %62 = vector.load %arg21[%c2_48, %c7_49, %c0_50] : memref<10x24x32xf32, #tpu.memory_space<vmem>>, vector<8x8x32xf32>
      %63 = vector.shape_cast %62 : vector<8x8x32xf32> to vector<64x32xf32>
      %c6 = arith.constant 6 : index
      %c0_51 = arith.constant 0 : index
      %c0_52 = arith.constant 0 : index
      %64 = vector.load %arg10[%c6, %c0_51, %c0_52] : memref<9x32x32xf32, #tpu.memory_space<vmem>>, vector<1x32x32xf32>
      %65 = vector.shape_cast %64 : vector<1x32x32xf32> to vector<32x32xf32>
      %cst_53 = arith.constant dense<0.000000e+00> : vector<64x32xf32>
      %66 = tpu.matmul %63, %65, %cst_53 {dimension_numbers = #tpu.dot_dimension_numbers<[1], [0], [0], [1], [0, 0, 1, 1], [], []>} : vector<64x32xf32>, vector<32x32xf32>, vector<64x32xf32> -> vector<64x32xf32>
      %67 = arith.addf %61, %66 : vector<64x32xf32>
      %c2_54 = arith.constant 2 : index
      %c8_55 = arith.constant 8 : index
      %c0_56 = arith.constant 0 : index
      %68 = vector.load %arg21[%c2_54, %c8_55, %c0_56] : memref<10x24x32xf32, #tpu.memory_space<vmem>>, vector<8x8x32xf32>
      %69 = vector.shape_cast %68 : vector<8x8x32xf32> to vector<64x32xf32>
      %c7_57 = arith.constant 7 : index
      %c0_58 = arith.constant 0 : index
      %c0_59 = arith.constant 0 : index
      %70 = vector.load %arg10[%c7_57, %c0_58, %c0_59] : memref<9x32x32xf32, #tpu.memory_space<vmem>>, vector<1x32x32xf32>
      %71 = vector.shape_cast %70 : vector<1x32x32xf32> to vector<32x32xf32>
      %cst_60 = arith.constant dense<0.000000e+00> : vector<64x32xf32>
      %72 = tpu.matmul %69, %71, %cst_60 {dimension_numbers = #tpu.dot_dimension_numbers<[1], [0], [0], [1], [0, 0, 1, 1], [], []>} : vector<64x32xf32>, vector<32x32xf32>, vector<64x32xf32> -> vector<64x32xf32>
      %73 = arith.addf %67, %72 : vector<64x32xf32>
      %c2_61 = arith.constant 2 : index
      %c9_62 = arith.constant 9 : index
      %c0_63 = arith.constant 0 : index
      %74 = vector.load %arg21[%c2_61, %c9_62, %c0_63] : memref<10x24x32xf32, #tpu.memory_space<vmem>>, vector<8x8x32xf32>
      %75 = vector.shape_cast %74 : vector<8x8x32xf32> to vector<64x32xf32>
      %c8_64 = arith.constant 8 : index
      %c0_65 = arith.constant 0 : index
      %c0_66 = arith.constant 0 : index
      %76 = vector.load %arg10[%c8_64, %c0_65, %c0_66] : memref<9x32x32xf32, #tpu.memory_space<vmem>>, vector<1x32x32xf32>
      %77 = vector.shape_cast %76 : vector<1x32x32xf32> to vector<32x32xf32>
      %cst_67 = arith.constant dense<0.000000e+00> : vector<64x32xf32>
      %78 = tpu.matmul %75, %77, %cst_67 {dimension_numbers = #tpu.dot_dimension_numbers<[1], [0], [0], [1], [0, 0, 1, 1], [], []>} : vector<64x32xf32>, vector<32x32xf32>, vector<64x32xf32> -> vector<64x32xf32>
      %79 = arith.addf %73, %78 : vector<64x32xf32>
      %80 = arith.index_cast %arg1 : i32 to index
      %c0_68 = arith.constant 0 : index
      %c0_69 = arith.constant 0 : index
      %81 = vector.load %arg17[%80, %c0_68, %c0_69] : memref<2x1x32xf32, #tpu.memory_space<vmem>>, vector<1x1x32xf32>
      %82 = vector.shape_cast %81 : vector<1x1x32xf32> to vector<1x32xf32>
      %83 = vector.broadcast %82 : vector<1x32xf32> to vector<64x32xf32>
      %84 = arith.mulf %79, %83 : vector<64x32xf32>
      %85 = arith.index_cast %arg1 : i32 to index
      %c0_70 = arith.constant 0 : index
      %c0_71 = arith.constant 0 : index
      %86 = vector.load %arg19[%85, %c0_70, %c0_71] : memref<2x64x32xf32, #tpu.memory_space<vmem>>, vector<1x64x32xf32>
      %87 = vector.shape_cast %86 : vector<1x64x32xf32> to vector<64x32xf32>
      %88 = arith.addf %84, %87 : vector<64x32xf32>
      %89 = vector.shape_cast %88 : vector<64x32xf32> to vector<8x8x32xf32>
      %c0_72 = arith.constant 0 : index
      %c0_73 = arith.constant 0 : index
      %c0_74 = arith.constant 0 : index
      %c0_75 = arith.constant 0 : index
      %90 = vector.load %arg12[%c0_72, %c0_73, %c0_74, %c0_75] : memref<1x8x8x32xf32, #tpu.memory_space<vmem>>, vector<1x8x8x32xf32>
      %91 = vector.shape_cast %90 : vector<1x8x8x32xf32> to vector<8x8x32xf32>
      %92 = vector.shape_cast %89 : vector<8x8x32xf32> to vector<1x8x8x32xf32>
      tpu.vector_store %arg12[%c0_72, %c0_73, %c0_74, %c0_75], %92 {strides = array<i32>} : memref<1x8x8x32xf32, #tpu.memory_space<vmem>>, vector<1x8x8x32xf32>,
    } else {
    }
    return
  }
  func.func @transform_0(%arg0: i32, %arg1: i32) -> (i32, i32, i32, i32) {
    %c2_i32 = arith.constant 2 : i32
    %0 = arith.cmpi slt, %arg0, %c2_i32 : i32
    %c0_i32 = arith.constant 0 : i32
    %1 = arith.select %0, %arg1, %c0_i32 : i32
    %c0_i32_0 = arith.constant 0 : i32
    %c0_i32_1 = arith.constant 0 : i32
    %c0_i32_2 = arith.constant 0 : i32
    %c0_i32_3 = arith.constant 0 : i32
    return %1, %c0_i32_0, %c0_i32_1, %c0_i32_2 : i32, i32, i32, i32
  }
  func.func @transform_1(%arg0: i32, %arg1: i32) -> (i32, i32) {
    %c0_i32 = arith.constant 0 : i32
    %c0_i32_0 = arith.constant 0 : i32
    %c0_i32_1 = arith.constant 0 : i32
    return %c0_i32, %c0_i32_0 : i32, i32
  }
  func.func @transform_2(%arg0: i32, %arg1: i32) -> (i32, i32) {
    %c0_i32 = arith.constant 0 : i32
    %c0_i32_0 = arith.constant 0 : i32
    %c0_i32_1 = arith.constant 0 : i32
    return %c0_i32, %c0_i32_0 : i32, i32
  }
  func.func @transform_3(%arg0: i32, %arg1: i32) -> (i32, i32) {
    %c0_i32 = arith.constant 0 : i32
    %c0_i32_0 = arith.constant 0 : i32
    %c0_i32_1 = arith.constant 0 : i32
    return %c0_i32, %c0_i32_0 : i32, i32
  }
  func.func @transform_4(%arg0: i32, %arg1: i32) -> (i32, i32) {
    %c0_i32 = arith.constant 0 : i32
    %c0_i32_0 = arith.constant 0 : i32
    %c0_i32_1 = arith.constant 0 : i32
    return %c0_i32, %c0_i32_0 : i32, i32
  }
  func.func @transform_5(%arg0: i32, %arg1: i32) -> (i32, i32) {
    %c0_i32 = arith.constant 0 : i32
    %c0_i32_0 = arith.constant 0 : i32
    %c0_i32_1 = arith.constant 0 : i32
    return %c0_i32, %c0_i32_0 : i32, i32
  }
  func.func @transform_6(%arg0: i32, %arg1: i32) -> (i32, i32) {
    %c0_i32 = arith.constant 0 : i32
    %c0_i32_0 = arith.constant 0 : i32
    %c0_i32_1 = arith.constant 0 : i32
    return %c0_i32, %c0_i32_0 : i32, i32
  }
  func.func @transform_7(%arg0: i32, %arg1: i32) -> (i32, i32, i32) {
    %c0_i32 = arith.constant 0 : i32
    %c0_i32_0 = arith.constant 0 : i32
    %c0_i32_1 = arith.constant 0 : i32
    %c0_i32_2 = arith.constant 0 : i32
    return %c0_i32, %c0_i32_0, %c0_i32_1 : i32, i32, i32
  }
  func.func @transform_8(%arg0: i32, %arg1: i32) -> (i32, i32, i32) {
    %c0_i32 = arith.constant 0 : i32
    %c0_i32_0 = arith.constant 0 : i32
    %c0_i32_1 = arith.constant 0 : i32
    %c0_i32_2 = arith.constant 0 : i32
    return %c0_i32, %c0_i32_0, %c0_i32_1 : i32, i32, i32
  }
  func.func @transform_9(%arg0: i32, %arg1: i32) -> (i32, i32) {
    %c0_i32 = arith.constant 0 : i32
    %c0_i32_0 = arith.constant 0 : i32
    %c0_i32_1 = arith.constant 0 : i32
    return %c0_i32, %c0_i32_0 : i32, i32
  }
  func.func @transform_10(%arg0: i32, %arg1: i32) -> (i32, i32, i32, i32) {
    %c2_i32 = arith.constant 2 : i32
    %0 = arith.cmpi eq, %arg0, %c2_i32 : i32
    %c0_i32 = arith.constant 0 : i32
    %1 = arith.select %0, %arg1, %c0_i32 : i32
    %c0_i32_0 = arith.constant 0 : i32
    %c0_i32_1 = arith.constant 0 : i32
    %c0_i32_2 = arith.constant 0 : i32
    %c0_i32_3 = arith.constant 0 : i32
    return %1, %c0_i32_0, %c0_i32_1, %c0_i32_2 : i32, i32, i32, i32
  }
}

</mosaic_0001>

<bundles_post_ra>
// kernel: se_preact_block_forward.1
= control target key start
LH: loop header
LB: loop body
LE: loop exit
PB: predicated region body
PF: predicated region fallthrough
CT: control target
= control target key end

     0   :  { %s4181_s0 = inlined_call_operand.hbm [shape: f32[2,8,8,16], index: 0, kind: input, shape index: {}]   ;;  %s4182_s1 = inlined_call_operand.vmem [shape: f32[16,2], index: 1, kind: input, shape index: {}]   ;;  %s4183_s2 = inlined_call_operand.vmem [shape: f32[2,32], index: 2, kind: input, shape index: {}]   ;;  %s4184_s3 = inlined_call_operand.vmem [shape: f32[1,16], index: 3, kind: input, shape index: {}]   ;;  %s4185_s4 = inlined_call_operand.vmem [shape: f32[1,16], index: 4, kind: input, shape index: {}]   ;;  %s4186_s5 = inlined_call_operand.vmem [shape: f32[1,32], index: 5, kind: input, shape index: {}]   ;;  %s4187_s6 = inlined_call_operand.vmem [shape: f32[1,32], index: 6, kind: input, shape index: {}]   ;;  %s4188_s7 = inlined_call_operand.hbm [shape: f32[9,16,32], index: 7, kind: input, shape index: {}]   ;;  %s4189_s8 = inlined_call_operand.hbm [shape: f32[9,32,32], index: 8, kind: input, shape index: {}]   ;;  %s4190_s9 = inlined_call_operand.vmem [shape: f32[16,32], index: 9, kind: input, shape index: {}]   ;;  %s4191_s10 = inlined_call_operand.hbm [shape: f32[2,8,8,32], index: 10, kind: output, shape index: {}]  }
   0x1   :  { %4204 = sst [smem:[#allocation28_spill]] %s4183_s2 }
   0x2   :  { %4205 = sst [smem:[#allocation29_spill]] %s4184_s3 }
   0x3   :  { %4206 = sst [smem:[#allocation30_spill]] %s4185_s4 }
   0x4   :  { %4207 = sst [smem:[#allocation31_spill]] %s4186_s5 }
   0x5   :  { %4208 = sst [smem:[#allocation32_spill]] %s4187_s6 }
   0x6   :  { %4209 = sst [smem:[#allocation33_spill]] %s4188_s7 }
   0x7   :  { %4210 = sst [smem:[#allocation34_spill]] %s4189_s8 }
   0x8   :  { %4211 = sst [smem:[#allocation35_spill]] %s4190_s9 }
   0x9   :  { %4212 = sst [smem:[#allocation36_spill]] %s4191_s10 }
   0xa   :  { %15 = vsyncpa [#allocation12], 0 }
   0xb   :  { %17 = vsyncpa [#allocation12 + $0x1], 0 }
   0xc   :  { %18 = vsyncpa [#allocation15], 0 }
   0xd   :  { %19 = vsyncpa [#allocation13], 0 }
   0xe   :  { %21 = vsyncpa [#allocation13 + $0x1], 0  ;;  %s3272_s13 = smov 0   ;;  %s3274_s14 = smov 0  }
   0xf   :  { %s3276_s15 = smov 0   ;;  %s3278_s16 = smov 0  }
  0x10   :  { %s3280_s17 = smov 0   ;;  %s3282_s18 = smov 0  }
  0x11   :  { %s3284_s19 = smov 0   ;;  %s3286_s20 = smov 0  }
  0x12   :  { %s3288_s21 = smov 0   ;;  %s3290_s22 = smov 0  }
  0x13   :  { %s3292_s23 = smov 0  }
  0x14 LB: > { %4213 = sst [smem:[#allocation21_spill]] %s3166_s13  ;;  %s2644_s24 = sadd.s32 4294967295, %s3206_s23   ;;  %s3206_s23 = sphi %s3292_s23, %s27_s23   ;;  %s3202_s22 = sphi %s3290_s22, %s4243_s22   ;;  %s3198_s21 = sphi %s3288_s21, %s4242_s21   ;;  %s3194_s20 = sphi %s3286_s20, %s4241_s20   ;;  %s3190_s19 = sphi %s3284_s19, %s4240_s19   ;;  %s3186_s18 = sphi %s3282_s18, %s4249_s18   ;;  %s3182_s17 = sphi %s3280_s17, %s4248_s17   ;;  %s3178_s16 = sphi %s3278_s16, %s4247_s16   ;;  %s3174_s15 = sphi %s3276_s15, %s4246_s15   ;;  %s3170_s14 = sphi %s3274_s14, %s4245_s14   ;;  %s3166_s13 = sphi %s3272_s13, %s4244_s13  }
  0x15   : > { %4214 = sst [smem:[#allocation22_spill]] %s3198_s21  ;;  %s2645_s25 = sadd.s32 4294967294, %s3206_s23  }
  0x16   : > { %4215 = sst [smem:[#allocation23_spill]] %s3202_s22  ;;  %p63_p0 = scmp.ne.s32.totalorder %s3182_s17, %s3178_s16 }
  0x17   : > { %p3328_p1 = scmp.eq.s32.totalorder %s2644_s24, 0  ;;  %p279_p2 = scmp.ne.s32.totalorder %s3174_s15, %s3170_s14 }
  0x18   : > { %p280_p3 = scmp.eq.s32.totalorder %s2644_s24, 5  ;;  %p285_p5 = scmp.ne.s32.totalorder %s3170_s14, %s3166_s13 }
  0x19   : > { %p3336_p4 = por %p3328_p1, %p63_p0  ;;  %p286_p7 = scmp.eq.s32.totalorder %s2645_s25, 5 }
  0x1a   : > { %p3342_p6 = por %p280_p3, %p279_p2  ;;  %p2646_p8 = scmp.ge.s32.totalorder %s3206_s23, 1 }
  0x1b   : > { %p293_p9 = scmp.lt.s32.totalorder %s3206_s23, 7  ;;  %p3348_p10 = por %p286_p7, %p285_p5 }
  0x1c   : > { %s4218_s28 = scalar_select %p3342_p6, 1, 0 }
  0x1d   : > { %s4220_s29 = scalar_select %p3348_p10, 1, 0 }
  0x1e   : > { %4219 = sst [smem:[#allocation24_spill]] %s4218_s28  ;;  %p3352_p11 = pnand %p2646_p8, %p293_p9 }
  0x1f   : > { %4221 = sst [smem:[#allocation25_spill]] %s4220_s29  ;;  %s3208_s24 = smov [#allocation14]  }
  0x20   : > { %s4223_s7 = sld [smem:[#allocation33_spill]]  ;;  %p2859_p12 = pneg %p3352_p11 }
  0x21   : > { %s324_s25 = sshll.u32 %s3208_s24, 4  ;;  %s4224_s8 = sld [smem:[#allocation34_spill]]  ;;  %s325_s25 = int_to_ptr.vmem [resolvable:$true] %s324_s25 }
  0x22   : > { %p2860_p13 = pnand %p2859_p12, %p3328_p1  ;;  %s4195_s11 = smov 128  }
  0x23   : > { %s4196_s12 = smov 8   ;;  %s3211_s24 = smov [#allocation16]  }
  0x24   : > { %s36_s13 = sadd.s32 1, %s3198_s21  ;;  %s39_s29 = sadd.s32 1, %s3202_s22 }
  0x25   : > { %p37_p0 = scmp.ge.s32.totalorder %s36_s13, 2  ;;  %p43_p2 = scmp.lt.s32.totalorder %s3202_s22, 2 }
  0x26   : > { %s322_s16 = sshll.u32 %s4223_s7, 4  ;;  %s338_s7 = sshll.u32 %s3211_s24, 4  ;;  %s323_s16 = int_to_ptr.hbm [resolvable:$true] %s322_s16  ;;  %s339_s7 = int_to_ptr.vmem [resolvable:$true] %s338_s7 }
  0x27   : > { %s336_s10 = sshll.u32 %s4224_s8, 4  ;;  %s50_s8 = sadd.s32 1, %s3186_s18  ;;  %s337_s10 = int_to_ptr.hbm [resolvable:$true] %s336_s10 }
  0x28   : > { %2862 = dma.hbm_to_vmem [thread:$0]  (!%p2860_p13), %s323_s16, 2304, %s325_s25, [#allocation15], %s4195_s11, %s4195_s11, %s4196_s12  }
  0x29   : > { %2865 = dma.hbm_to_vmem [thread:$0]  (!%p2860_p13), %s337_s10, 4608, %s339_s7, [#allocation15], %s4195_s11, %s4195_s11, %s4196_s12  }
  0x2a   : > { %s4251_s13 = smov (%p37_p0, %s36_s13), 0  ;;  %s4253_s29 = smov (!%p37_p0, %s39_s29), %s3202_s22 }
  0x2b   : > { %4225 = sst [smem:[#allocation26_spill]] %s4251_s13  ;;  %p41_p3 = scmp.ge.s32.totalorder %s4253_s29, 3 }
  0x2c   : > { %s44_s16 = scalar_select %p43_p2, %s3198_s21, 0 }
  0x2d   : > { %p57_p5 = scmp.ne.s32.totalorder %s3186_s18, %s3182_s17  ;;  %p58_p7 = scmp.eq.s32.totalorder %s3206_s23, 0 }
  0x2e   : > { %p262_p8 = scmp.eq.s32.totalorder %s3202_s22, 2  ;;  %s4255_s29 = smov (%p41_p3, %s4253_s29), 0 }
  0x2f   : > { %4226 = sst [smem:[#allocation27_spill]] %s4255_s29  ;;  %p3386_p9 = por %p58_p7, %p57_p5 }
  0x30   : > { %s269_s10 = sadd.s32 1, %s3174_s15  ;;  %p45_p12 = scmp.lt.s32.totalorder %s4255_s29, 2 }
  0x31   : > { %p264_p13 = scmp.eq.s32.totalorder %s4255_s29, 2  ;;  %p2876_p0 = scmp.lt.s32.totalorder %s3206_s23, 6 }
  0x32   : > { %s263_s25 = scalar_select %p262_p8, %s3198_s21, 0 }
  0x33   : > { %s46_s24 = scalar_select %p45_p12, %s4251_s13, 0 }
  0x34   : > { %s265_s11 = scalar_select %p264_p13, %s4251_s13, 0 }
  0x35   : > { %s47_s12 = ssub.s32 %s44_s16, %s46_s24  ;;  %s355_s28 = sand.u32 1, %s3186_s18  }
  0x36   : > { %p48_p2 = scmp.eq.s32.totalorder %s47_s12, 0  ;;  %s266_s22 = ssub.s32 %s263_s25, %s265_s11 }
  0x37   : > { %p267_p3 = scmp.eq.s32.totalorder %s266_s22, 0  ;;  %s2650_s9 = sshll.u32 %s355_s28, 6 }
  0x38   : > { %s3399_s6 = scalar_select %p48_p2, %s3186_s18, %s50_s8  }
  0x39   : > { %s3402_s5 = scalar_select %p267_p3, %s3174_s15, %s269_s10  }
  0x3a   : > { %s2829_s4 = sshll.u32 %s44_s16, 6  ;;  %s359_s21 = scalar_lea.vmem [#allocation11], %s2650_s9 }
  0x3b   : > { %s366_s29 = scalar_lea.hbm %s4181_s0, %s2829_s4  ;;  %s369_s13 = sshll.u32 %s359_s21, 4  ;;  %s370_s13 = int_to_ptr.vmem [resolvable:$true] %s369_s13 }
  0x3c   : > { %s367_s24 = sshll.u32 %s366_s29, 4  ;;  %p2867_p5 = pnand %p2876_p0, %p3386_p9  ;;  %s368_s24 = int_to_ptr.hbm [resolvable:$true] %s367_s24 }
  0x3d   : > { %s356_s22 = scalar_lea.sflag [#allocation12], %s355_s28  ;;  %s4228_s11 = smov 8  }
  0x3e   : > { %s4229_s8 = smov 128   ;;  %381 = sbr.rel (%p3352_p11) target bundleno = 1205 (0x4b5), region = 60 }
  0x3f   : > { %2869 = dma.hbm_to_vmem [thread:$0]  (!%p2867_p5), %s368_s24, 1024, %s370_s13, %s356_s22, %s4229_s8, %s4229_s8, %s4228_s11  }
  0x40   : > { %s383_s2 = sand.u32 (!%p3352_p11), 1, %s3182_s17  }
  0x41   : > { %s2654_s3 = sshll.u32 (!%p3352_p11), %s383_s2, 6  ;;  %s384_s4 = scalar_lea.sflag (!%p3352_p11), [#allocation12], %s383_s2 }
  0x42   : > { %s3417_s9 = scalar_lea.vmem (!%p3352_p11), [#allocation11], %s2654_s3 }
  0x43   : > { %3153 = dma.done.wait (%p3336_p4), %s384_s4, 1024  }
  0x44   : > { %3155 = vsyncadd (%p3336_p4), %s384_s4, 4294966272 }
  0x45   : > { %3157 = dma.done.wait (%p3328_p1), [#allocation15], 6912  }
  0x46   : > { %3159 = vsyncadd (%p3328_p1), [#allocation15], 4294960384  ;;  %s432_s21 = sand.u32 1, %s3170_s14   ;;  %p2658_p11 = scmp.ne.s32.totalorder %s3194_s20, 0 }
  0x47   : > { %s2657_s28 = sshll.u32 %s432_s21, 6  ;;  %p2659_p7 = scmp.ne.s32.totalorder (!%p2658_p11), %s3190_s19, 0 }
  0x48   : > { %s3430_s30 = scalar_lea.vmem [#allocation17], %s2657_s28  ;;  %442 = sbr.rel (%p2658_p11) target bundleno = 433 (0x1b1), region = 76 }
  0x4d   : > { %446 = sbr.rel (%p2659_p7) target bundleno = 85 (0x55), region = 80 }
  0x52   : > { %vm447_vm0 = vcmask 122880   ;;  %v3212_v0 = vmov 0.0  }
  0x53   : > { %448 = vst.msk [vmem:[#allocation2] sm:$0x1] %vm447_vm0, %v3212_v0 }
  0x54   : > { %449 = vst.msk [vmem:[#allocation3] sm:$0x1] %vm447_vm0, %v3212_v0 }
  0x55 PF: > { %v518_v1 = vld [vmem:[%s4182_s1 + $0x8] sm:$0xff]  ;;  %v517_v2 = vld [vmem:[%s4182_s1] sm:$0xff]  ;;  %vm458_vm1 = vcmask 130048   ;;  %v452_v5 = vld [vmem:[%s3417_s9 + $0x10] sm:$0xff]  ;;  %vm482_vm2 = vcmask 122880   ;;  %s4230_s7 = sld [smem:[#allocation28_spill]] }
  0x56   : > { %v450_v3 = vld [vmem:[%s3417_s9] sm:$0xff]  ;;  %536 = vmatpush.msra.mxu0 %v518_v1  ;;  %v451_v4 = vld [vmem:[%s3417_s9 + $0x8] sm:$0xff]  ;;  %v453_v6 = vld [vmem:[%s3417_s9 + $0x18] sm:$0xff]  ;;  %v462_v10 = vsel %vm458_vm1, %v452_v5, 0.0  ;;  %v487_v15 = vmul.f32 %v452_v5, %v452_v5  ;;  %vm548_vm3 = vcmask 1041408   ;;  %vm544_vm4 = vcmask 15360  }
  0x57   : > { %v459_v7 = vsel %vm458_vm1, %v450_v3, 0.0  ;;  %v454_v8 = vld [vmem:[%s3417_s9 + $0x20] sm:$0xff]  ;;  %v460_v9 = vsel %vm458_vm1, %v451_v4, 0.0  ;;  %v485_v11 = vmul.f32 %v450_v3, %v450_v3  ;;  %v486_v12 = vmul.f32 %v451_v4, %v451_v4  ;;  %v455_v17 = vld [vmem:[%s3417_s9 + $0x28] sm:$0xff]  ;;  %v456_v24 = vld [vmem:[%s3417_s9 + $0x30] sm:$0xff]  ;;  %s591_s10 = scalar_lea.vmem [#allocation6], %s3190_s19 }
  0x58   : > { %537 = vmatpush.msra.mxu0 %v517_v2  ;;  %v461_v13 = vadd.f32 %v460_v9, %v459_v7  ;;  %v464_v14 = vsel %vm458_vm1, %v453_v6, 0.0  ;;  %v488_v16 = vmul.f32 %v453_v6, %v453_v6  ;;  %v466_v19 = vsel %vm458_vm1, %v454_v8, 0.0  ;;  %v457_v30 = vld [vmem:[%s3417_s9 + $0x38] sm:$0xff]  ;;  %p2664_p1 = scmp.ne.s32.totalorder %s3190_s19, 1 }
  0x59   : > { %v489_v20 = vmul.f32 %v454_v8, %v454_v8  ;;  %v493_v21 = vsel %vm458_vm1, %v485_v11, 0.0  ;;  %v494_v22 = vsel %vm458_vm1, %v486_v12, 0.0  ;;  %v496_v23 = vsel %vm458_vm1, %v487_v15, 0.0  ;;  %s4231_s22 = sld [smem:[#allocation29_spill]] (!%p2664_p1) }
  0x5a   : > { %v463_v18 = vadd.f32 %v462_v10, %v461_v13  ;;  %v495_v26 = vadd.f32 %v494_v22, %v493_v21  ;;  %v468_v27 = vsel %vm458_vm1, %v455_v17, 0.0  ;;  %v490_v28 = vmul.f32 %v455_v17, %v455_v17  ;;  %v480_v57 = vld [vmem:[#allocation2] sm:$0x1]  ;;  %s4232_s2 = sld [smem:[#allocation30_spill]] (!%p2664_p1) }
  0x5b   : > { %v498_v29 = vsel %vm458_vm1, %v488_v16, 0.0  ;;  %v470_v33 = vsel %vm458_vm1, %v456_v24, 0.0  ;;  %v491_v34 = vmul.f32 %v456_v24, %v456_v24  ;;  %v500_v35 = vsel %vm458_vm1, %v489_v20, 0.0  ;;  %v484_v63 = vld [vmem:[#allocation3] sm:$0x1] }
  0x5c   : > { %v465_v25 = vadd.f32 %v464_v14, %v463_v18  ;;  %v497_v32 = vadd.f32 %v496_v23, %v495_v26  ;;  %v472_v38 = vsel %vm458_vm1, %v457_v30, 0.0  ;;  %v492_v39 = vmul.f32 %v457_v30, %v457_v30  ;;  %v543_v2 = vld [vmem:[%s4230_s7] sm:$0x3] }
  0x5d   : > { %v502_v40 = vsel %vm458_vm1, %v490_v28, 0.0  ;;  %v504_v43 = vsel %vm458_vm1, %v491_v34, 0.0  ;;  %2661 = vmatpush.msk.msra.mxu1 %vm548_vm3, %v543_v2  ;;  %vm592_vm8 = vcmask 253952  }
  0x5e   : > { %v467_v31 = vadd.f32 %v466_v19, %v465_v25  ;;  %v499_v37 = vadd.f32 %v498_v29, %v497_v32  ;;  %v506_v46 = vsel %vm458_vm1, %v492_v39, 0.0 }
  0x60   : > { %v469_v36 = vadd.f32 %v468_v27, %v467_v31  ;;  %v501_v42 = vadd.f32 %v500_v35, %v499_v37 }
  0x62   : > { %v471_v41 = vadd.f32 %v470_v33, %v469_v36  ;;  %v503_v45 = vadd.f32 %v502_v40, %v501_v42 }
  0x64   : > { %v473_v44 = vadd.f32 %v472_v38, %v471_v41  ;;  %v505_v48 = vadd.f32 %v504_v43, %v503_v45 }
  0x66   : > { %v474_v47 = vrot.slane %v473_v44, 4  ;;  %v507_v50 = vadd.f32 %v506_v46, %v505_v48 }
  0x68   : > { %v475_v49 = vadd.f32 %v474_v47, %v473_v44  ;;  %v508_v52 = vrot.slane %v507_v50, 4 }
  0x6a   : > { %v476_v51 = vrot.slane %v475_v49, 2  ;;  %v509_v54 = vadd.f32 %v508_v52, %v507_v50 }
  0x6c   : > { %v477_v53 = vadd.f32 %v476_v51, %v475_v49  ;;  %v510_v56 = vrot.slane %v509_v54, 2 }
  0x6e   : > { %v478_v55 = vrot.slane %v477_v53, 1  ;;  %v511_v59 = vadd.f32 %v510_v56, %v509_v54 }
  0x70   : > { %v479_v58 = vadd.f32 %v478_v55, %v477_v53  ;;  %v512_v61 = vrot.slane %v511_v59, 1 }
  0x72   : > { %v481_v60 = vadd.f32 %v480_v57, %v479_v58  ;;  %v516_v62 = vmul.f32 0.015625, %v479_v58  ;;  %v513_v0 = vadd.f32 %v512_v61, %v511_v59 }
  0x74   : > { %483 = vst.msk [vmem:[#allocation2] sm:$0x1] %vm482_vm2, %v481_v60  ;;  %2660 = vmatmul.msk.f32.vlgmr.msra.gmra.mxu0 %vm458_vm1, %v516_v62  ;;  %v514_v1 = vadd.f32 %v513_v0, %v484_v63 }
  0x76   : > { %515 = vst.msk [vmem:[#allocation3] sm:$0x1] %vm482_vm2, %v514_v1 }
  0xf1   : > { %v539_v3 = vpop.f32.mrf.mxu0 }
  0xf2   : > { %v542_v4 = vmax.f32 %v539_v3, 0.0 }
  0xf4   : > { %2662 = vmatmul.msk.f32.vlgmr.msra.gmra.mxu1 %vm544_vm4, %v542_v4 }
 0x171   : > { %v569_v5 = vpop.f32.mrf.mxu1 }
 0x172   : > { %v2663_v6 = vmul.f32 -1.442695, %v569_v5 }
 0x174   : > { %2977 = vpow2.f32 %v2663_v6 }
 0x17a   : > { %v2978_v7 = vpop.eup %2977 }
 0x17b   : > { %v575_v8 = vadd.f32 1.0, %v2978_v7 }
 0x17d   : > { %2979 = vrcp.f32 %v575_v8  ;;  %v587_v12 = vand.u32 2147483648, %v575_v8  ;;  %v585_v14 = vand.u32 2147483647, %v575_v8  ;;  %vm581_vm6 = vweird.f32 %v575_v8 }
 0x17f   : > { %v588_v16 = vor.u32 1.1754944e-38, %v587_v12  ;;  %vm586_vm9 = vcmp.eq.f32.partialorder %v585_v14, 8.507059e+37 }
 0x183   : > { %v2980_v9 = vpop.eup %2979 }
 0x184   : > { %v577_v10 = vmul.f32 %v2980_v9, %v575_v8  ;;  %vm582_vm5 = vweird.f32 %v2980_v9 }
 0x185   : > { %vm583_vm7 = vmor %vm581_vm6, %vm582_vm5 }
 0x186   : > { %v578_v11 = vsub.f32 1.0, %v577_v10 }
 0x188   : > { %v579_v13 = vmul.f32 %v2980_v9, %v578_v11 }
 0x18a   : > { %v580_v15 = vadd.f32 %v2980_v9, %v579_v13  ;;  %597 = sbr.rel (%p2664_p1) target bundleno = 433 (0x1b1), region = 84 }
 0x18c   : > { %v584_v17 = vsel %vm583_vm7, %v2980_v9, %v580_v15 }
 0x18d   : > { %v589_v18 = vsel %vm586_vm9, %v588_v16, %v584_v17 }
 0x18e   : > { %593 = vst.msk [vmem:[%s591_s10] sm:$0x1] %vm592_vm8, %v589_v18 }
 0x18f   : > { %v598_v19 = vld [vmem:[#allocation2] sm:$0x1]  ;;  %v600_v20 = vld [vmem:[#allocation3] sm:$0x1] }
 0x190   : > { %v599_v21 = vmul.f32 0.0078125, %v598_v19  ;;  %v601_v22 = vmul.f32 0.0078125, %v600_v20  ;;  %v604_v31 = vld [vmem:[%s4231_s22] sm:$0x1] }
 0x191   : > { %v618_v35 = vld [vmem:[%s4232_s2] sm:$0x1] }
 0x192   : > { %v602_v23 = vmul.f32 %v599_v21, %v599_v21 }
 0x194   : > { %v603_v24 = vsub.f32 %v601_v22, %v602_v23 }
 0x196   : > { %v605_v25 = vadd.f32 1e-05, %v603_v24 }
 0x198   : > { %2981 = vrsqrt.f32 %v605_v25  ;;  %vm612_vm10 = vweird.f32 %v605_v25 }
 0x19e   : > { %v2982_v26 = vpop.eup %2981 }
 0x19f   : > { %v607_v27 = vmul.f32 %v2982_v26, %v605_v25  ;;  %vm613_vm11 = vweird.f32 %v2982_v26 }
 0x1a0   : > { %vm614_vm12 = vmor %vm612_vm10, %vm613_vm11 }
 0x1a1   : > { %v608_v28 = vmul.f32 %v2982_v26, %v607_v27 }
 0x1a3   : > { %v609_v29 = vmul.f32 0.5, %v608_v28 }
 0x1a5   : > { %v610_v30 = vsub.f32 1.5, %v609_v29 }
 0x1a7   : > { %v611_v32 = vmul.f32 %v2982_v26, %v610_v30 }
 0x1a9   : > { %v615_v33 = vsel %vm614_vm12, %v2982_v26, %v611_v32 }
 0x1aa   : > { %v616_v34 = vmul.f32 %v615_v33, %v604_v31 }
 0x1ac   : > { %617 = vst.msk [vmem:[#allocation2] sm:$0x1] %vm482_vm2, %v616_v34  ;;  %v619_v36 = vmul.f32 %v616_v34, %v599_v21 }
 0x1ae   : > { %v620_v37 = vsub.f32 %v618_v35, %v619_v36 }
 0x1b0   : > { %621 = vst.msk [vmem:[#allocation3] sm:$0x1] %vm482_vm2, %v620_v37 }
 0x1b1 PF: > { %p2665_p4 = scmp.ne.s32.totalorder %s3194_s20, 1 }
 0x1b2   : > { %p2666_p8 = scmp.ne.s32.totalorder (!%p2665_p4), %s3190_s19, 0 }
 0x1b3   : > { %625 = sbr.rel (%p2665_p4) target bundleno = 843 (0x34b), region = 88 }
 0x1b8   : > { %629 = sbr.rel (%p2666_p8) target bundleno = 478 (0x1de), region = 92 }
 0x1bd   : > { %vm630_vm13 = vcmask 253952   ;;  %vm633_vm14 = vcmask 130048   ;;  %v3213_v38 = vmov 0.0  }
 0x1be   : > { %631 = vst.msk [vmem:[#allocation4] sm:$0x1] %vm630_vm13, %v3213_v38 }
 0x1bf   : > { %632 = vst.msk [vmem:[#allocation5] sm:$0x1] %vm630_vm13, %v3213_v38 }
 0x1c0   : > { %634 = vst.msk [vmem:[#allocation9] sm:$0xff] %vm633_vm14, %v3213_v38 }
 0x1c1   : > { %635 = vst.msk [vmem:[#allocation9 + $0x8] sm:$0xff] %vm633_vm14, %v3213_v38 }
 0x1c2   : > { %636 = vst.msk [vmem:[#allocation9 + $0x10] sm:$0xff] %vm633_vm14, %v3213_v38 }
 0x1c3   : > { %637 = vst.msk [vmem:[#allocation9 + $0x18] sm:$0xff] %vm633_vm14, %v3213_v38 }
 0x1c4   : > { %638 = vst.msk [vmem:[#allocation9 + $0x20] sm:$0xff] %vm633_vm14, %v3213_v38 }
 0x1c5   : > { %639 = vst.msk [vmem:[#allocation9 + $0x28] sm:$0xff] %vm633_vm14, %v3213_v38 }
 0x1c6   : > { %640 = vst.msk [vmem:[#allocation9 + $0x30] sm:$0xff] %vm633_vm14, %v3213_v38 }
 0x1c7   : > { %641 = vst.msk [vmem:[#allocation9 + $0x38] sm:$0xff] %vm633_vm14, %v3213_v38 }
 0x1c8   : > { %642 = vst.msk [vmem:[#allocation9 + $0x40] sm:$0xff] %vm633_vm14, %v3213_v38 }
 0x1c9   : > { %643 = vst.msk [vmem:[#allocation9 + $0x48] sm:$0xff] %vm633_vm14, %v3213_v38 }
 0x1ca   : > { %644 = vst.msk [vmem:[#allocation9 + $0x50] sm:$0xff] %vm633_vm14, %v3213_v38 }
 0x1cb   : > { %645 = vst.msk [vmem:[#allocation9 + $0x58] sm:$0xff] %vm633_vm14, %v3213_v38 }
 0x1cc   : > { %646 = vst.msk [vmem:[#allocation9 + $0x60] sm:$0xff] %vm633_vm14, %v3213_v38 }
 0x1cd   : > { %647 = vst.msk [vmem:[#allocation9 + $0x68] sm:$0xff] %vm633_vm14, %v3213_v38 }
 0x1ce   : > { %648 = vst.msk [vmem:[#allocation9 + $0x70] sm:$0xff] %vm633_vm14, %v3213_v38 }
 0x1cf   : > { %649 = vst.msk [vmem:[#allocation9 + $0x78] sm:$0xff] %vm633_vm14, %v3213_v38 }
 0x1d0   : > { %650 = vst.msk [vmem:[#allocation9 + $0x80] sm:$0xff] %vm633_vm14, %v3213_v38 }
 0x1d1   : > { %651 = vst.msk [vmem:[#allocation9 + $0x88] sm:$0xff] %vm633_vm14, %v3213_v38 }
 0x1d2   : > { %652 = vst.msk [vmem:[#allocation9 + $0x90] sm:$0xff] %vm633_vm14, %v3213_v38 }
 0x1d3   : > { %653 = vst.msk [vmem:[#allocation9 + $0x98] sm:$0xff] %vm633_vm14, %v3213_v38 }
 0x1d4   : > { %654 = vst.msk [vmem:[#allocation9 + $0xa0] sm:$0xff] %vm633_vm14, %v3213_v38 }
 0x1d5   : > { %655 = vst.msk [vmem:[#allocation9 + $0xa8] sm:$0xff] %vm633_vm14, %v3213_v38 }
 0x1d6   : > { %656 = vst.msk [vmem:[#allocation9 + $0xb0] sm:$0xff] %vm633_vm14, %v3213_v38 }
 0x1d7   : > { %657 = vst.msk [vmem:[#allocation9 + $0xb8] sm:$0xff] %vm633_vm14, %v3213_v38 }
 0x1d8   : > { %658 = vst.msk [vmem:[#allocation9 + $0xc0] sm:$0xff] %vm633_vm14, %v3213_v38 }
 0x1d9   : > { %659 = vst.msk [vmem:[#allocation9 + $0xc8] sm:$0xff] %vm633_vm14, %v3213_v38 }
 0x1da   : > { %660 = vst.msk [vmem:[#allocation9 + $0xd0] sm:$0xff] %vm633_vm14, %v3213_v38 }
 0x1db   : > { %661 = vst.msk [vmem:[#allocation9 + $0xd8] sm:$0xff] %vm633_vm14, %v3213_v38 }
 0x1dc   : > { %662 = vst.msk [vmem:[#allocation9 + $0xe0] sm:$0xff] %vm633_vm14, %v3213_v38 }
 0x1dd   : > { %663 = vst.msk [vmem:[#allocation9 + $0xe8] sm:$0xff] %vm633_vm14, %v3213_v38 }
 0x1de PF: > { %v734_v39 = vld [vmem:[#allocation14 + $0x18] sm:$0xff]  ;;  %v723_v40 = vld [vmem:[#allocation14 + $0x8] sm:$0xff]  ;;  %v733_v41 = vld [vmem:[#allocation14 + $0x10] sm:$0xff]  ;;  %vm705_vm15 = vcmask 130048   ;;  %s4233_s28 = sld [smem:[#allocation35_spill]]  ;;  %s2739_s27 = sshll.u32 %s3190_s19, 6 }
 0x1df   : > { %2831 = vmatpush.msra.mxu2 %v734_v39  ;;  %2833 = vmatpush.msra.mxu3 %v723_v40  ;;  %v722_v42 = vld [vmem:[#allocation14] sm:$0xff]  ;;  %v667_v43 = vld [vmem:[%s3417_s9 + $0x18] sm:$0xff]  ;;  %v875_v46 = vld [vmem:[#allocation14 + $0x28] sm:$0xff]  ;;  %vm1456_vm0 = vcmask 261120   ;;  %s3769_s12 = scalar_lea.vmem [#allocation8], %s2739_s27  ;;  %s3777_s13 = scalar_lea.vmem [#allocation7], %s2739_s27 }
 0x1e0   : > { %v3513_v44 = vld [vmem:[#allocation2] ss:$0 sm:$0xff]  ;;  %v3515_v45 = vld [vmem:[#allocation3] ss:$0 sm:$0xff]  ;;  %773 = vmatpush.msra.mxu0 %v734_v39  ;;  %838 = vmatpush.msra.mxu1 %v723_v40  ;;  %v668_v48 = vld [vmem:[%s3417_s9 + $0x20] sm:$0xff]  ;;  %vm1564_vm1 = vcmask 253952  }
 0x1e1   : > { %2832 = vmatpush.msra.mxu2 %v733_v41  ;;  %2834 = vmatpush.msra.mxu3 %v722_v42  ;;  %v959_v47 = vld [vmem:[#allocation14 + $0x38] sm:$0xff]  ;;  %v679_v49 = vmul.f32 %v3513_v44, %v667_v43  ;;  %v680_v50 = vmul.f32 %v3513_v44, %v668_v48  ;;  %v724_v51 = vld [vmem:[#allocation9 + $0x8] sm:$0xff]  ;;  %v874_v55 = vld [vmem:[#allocation14 + $0x20] sm:$0xff]  ;;  %p2748_p9 = scmp.ne.s32.totalorder %s3190_s19, 1 }
 0x1e2   : > { %v714_v52 = vld [vmem:[#allocation9 + $0x7] sm:$0xff]  ;;  %774 = vmatpush.msra.mxu0 %v733_v41  ;;  %839 = vmatpush.msra.mxu1 %v722_v42  ;;  %v958_v60 = vld [vmem:[#allocation14 + $0x30] sm:$0xff]  ;;  %v1127_v12 = vld [vmem:[#allocation14 + $0x58] sm:$0xff]  ;;  %s4234_s7 = sld [smem:[#allocation31_spill]] (!%p2748_p9) }
 0x1e3   : > { %914 = vmatpush.msrb.mxu2 %v875_v46  ;;  %998 = vmatpush.msrb.mxu3 %v959_v47  ;;  %v1043_v53 = vld [vmem:[#allocation14 + $0x48] sm:$0xff]  ;;  %v664_v56 = vld [vmem:[%s3417_s9] sm:$0xff]  ;;  %v3523_v57 = vadd.f32 %v3515_v45, %v679_v49  ;;  %v3526_v58 = vadd.f32 %v3515_v45, %v680_v50  ;;  %v670_v61 = vld [vmem:[%s3417_s9 + $0x30] sm:$0xff]  ;;  %s4235_s24 = sld [smem:[#allocation32_spill]] (!%p2748_p9) }
 0x1e4   : > { %v669_v54 = vld [vmem:[%s3417_s9 + $0x28] sm:$0xff]  ;;  %2667 = vmatmul.msk.f32.vlgmr.msra.gmra.mxu0 %vm705_vm15, %v724_v51  ;;  %2675 = vmatmul.msk.f32.vlgmr.msra.gmra.mxu1 %vm705_vm15, %v714_v52  ;;  %v676_v63 = vmul.f32 %v3513_v44, %v664_v56  ;;  %v682_v0 = vmul.f32 %v3513_v44, %v670_v61  ;;  %v666_v2 = vld [vmem:[%s3417_s9 + $0x10] sm:$0xff]  ;;  %v1042_v11 = vld [vmem:[#allocation14 + $0x40] sm:$0xff] }
 0x1e5   : > { %v681_v59 = vmul.f32 %v3513_v44, %v669_v54  ;;  %v665_v62 = vld [vmem:[%s3417_s9 + $0x8] sm:$0xff]  ;;  %1082 = vmatpush.msrb.mxu0 %v1043_v53  ;;  %915 = vmatpush.msrb.mxu2 %v874_v55  ;;  %v699_v3 = vmax.f32 %v3523_v57, 0.0  ;;  %v700_v4 = vmax.f32 %v3526_v58, 0.0  ;;  %v678_v6 = vmul.f32 %v3513_v44, %v666_v2  ;;  %v1296_v21 = vld [vmem:[#allocation14 + $0x78] sm:$0xff]  ;;  %v1126_v29 = vld [vmem:[#allocation14 + $0x50] sm:$0xff] }
 0x1e6   : > { %v677_v1 = vmul.f32 %v3513_v44, %v665_v62  ;;  %999 = vmatpush.msrb.mxu3 %v958_v60  ;;  %v3544_v7 = vadd.f32 %v3515_v45, %v676_v63  ;;  %v3547_v8 = vadd.f32 %v3515_v45, %v682_v0  ;;  %1166 = vmatpush.msrb.mxu1 %v1127_v12  ;;  %v1212_v20 = vld [vmem:[#allocation14 + $0x68] sm:$0xff]  ;;  %v1211_v39 = vld [vmem:[#allocation14 + $0x60] sm:$0xff]  ;;  %v1295_v40 = vld [vmem:[#allocation14 + $0x70] sm:$0xff] }
 0x1e7   : > { %v3540_v5 = vadd.f32 %v3515_v45, %v681_v59  ;;  %709 = vst.msk [vmem:[#allocation9 + $0x68] sm:$0xff] %vm705_vm15, %v699_v3  ;;  %v3557_v13 = vadd.f32 %v3515_v45, %v678_v6  ;;  %1083 = vmatpush.msrb.mxu0 %v1042_v11  ;;  %v1380_v28 = vld [vmem:[#allocation14 + $0x88] sm:$0xff]  ;;  %v1379_v42 = vld [vmem:[#allocation14 + $0x80] sm:$0xff]  ;;  %v671_v46 = vld [vmem:[%s3417_s9 + $0x38] sm:$0xff] }
 0x1e8   : > { %v3550_v9 = vadd.f32 %v3515_v45, %v677_v1  ;;  %710 = vst.msk [vmem:[#allocation9 + $0x80] sm:$0xff] %vm705_vm15, %v700_v4  ;;  %v696_v14 = vmax.f32 %v3544_v7, 0.0  ;;  %v702_v15 = vmax.f32 %v3547_v8, 0.0  ;;  %1167 = vmatpush.msrb.mxu1 %v1126_v29  ;;  %v1466_v36 = vld [vmem:[%s4233_s28 + $0x8] sm:$0xff]  ;;  %v683_v47 = vmul.f32 %v3513_v44, %v671_v46  ;;  %v1465_v44 = vld [vmem:[%s4233_s28] sm:$0xff] }
 0x1e9   : > { %v701_v10 = vmax.f32 %v3540_v5, 0.0  ;;  %v698_v17 = vmax.f32 %v3557_v13, 0.0  ;;  %1419 = vmatpush.msra.mxu0 %v1380_v28  ;;  %v865_v38 = vld [vmem:[#allocation9 + $0x9] sm:$0xff] }
 0x1ea   : > { %v697_v16 = vmax.f32 %v3550_v9, 0.0  ;;  %706 = vst.msk [vmem:[#allocation9 + $0x20] sm:$0xff] %vm705_vm15, %v696_v14  ;;  %1505 = vmatpush.msra.mxu1 %v1466_v36  ;;  %v3650_v48 = vadd.f32 %v3515_v45, %v683_v47 }
 0x1eb   : > { %711 = vst.msk [vmem:[#allocation9 + $0x98] sm:$0xff] %vm705_vm15, %v701_v10  ;;  %1420 = vmatpush.msra.mxu0 %v1379_v42 }
 0x1ec   : > { %712 = vst.msk [vmem:[#allocation9 + $0xb0] sm:$0xff] %vm705_vm15, %v702_v15  ;;  %v703_v49 = vmax.f32 %v3650_v48, 0.0  ;;  %1506 = vmatpush.msra.mxu1 %v1465_v44 }
 0x1ed   : > { %707 = vst.msk [vmem:[#allocation9 + $0x38] sm:$0xff] %vm705_vm15, %v697_v16 }
 0x1ee   : > { %708 = vst.msk [vmem:[#allocation9 + $0x50] sm:$0xff] %vm705_vm15, %v698_v17  ;;  %v3581_v18 = vld [vmem:[#allocation9 + $0x68] sm:$0xff] }
 0x1ef   : > { %v3583_v19 = vld [vmem:[#allocation9 + $0x67] sm:$0xff]  ;;  %2671 = vmatmul.msk.f32.vlgmr.msra.gmra.mxu2 %vm705_vm15, %v3581_v18  ;;  %v3593_v25 = vld [vmem:[#allocation9 + $0x7f] sm:$0xff]  ;;  %713 = vst.msk [vmem:[#allocation9 + $0xc8] sm:$0xff] %vm705_vm15, %v703_v49 }
 0x1f0   : > { %2679 = vmatmul.msk.f32.vlgmr.msra.gmra.mxu3 %vm705_vm15, %v3583_v19  ;;  %1251 = vmatpush.msra.mxu2 %v1212_v20  ;;  %v3591_v24 = vld [vmem:[#allocation9 + $0x80] sm:$0xff]  ;;  %v869_v50 = vld [vmem:[#allocation9 + $0x69] sm:$0xff] }
 0x1f1   : > { %v725_v22 = vld [vmem:[#allocation9 + $0x20] sm:$0xff]  ;;  %1335 = vmatpush.msra.mxu3 %v1296_v21 }
 0x1f2   : > { %v715_v23 = vld [vmem:[#allocation9 + $0x1f] sm:$0xff]  ;;  %2668 = vmatmul.msk.f32.gmra.mxu0 %vm705_vm15, %v725_v22  ;;  %v3609_v31 = vld [vmem:[#allocation9 + $0x97] sm:$0xff]  ;;  %1252 = vmatpush.msra.mxu2 %v1211_v39 }
 0x1f3   : > { %2676 = vmatmul.msk.f32.gmra.mxu1 %vm705_vm15, %v715_v23  ;;  %v3607_v30 = vld [vmem:[#allocation9 + $0x98] sm:$0xff]  ;;  %v3623_v34 = vld [vmem:[#allocation9 + $0xb0] sm:$0xff]  ;;  %v866_v37 = vld [vmem:[#allocation9 + $0x21] sm:$0xff]  ;;  %1336 = vmatpush.msra.mxu3 %v1295_v40 }
 0x1f4   : > { %v3595_v26 = vld [vmem:[#allocation9 + $0x38] sm:$0xff]  ;;  %v3625_v35 = vld [vmem:[#allocation9 + $0xaf] sm:$0xff]  ;;  %v870_v45 = vld [vmem:[#allocation9 + $0x81] sm:$0xff] }
 0x1f5   : > { %v3601_v27 = vld [vmem:[#allocation9 + $0x37] sm:$0xff]  ;;  %v3617_v33 = vld [vmem:[#allocation9 + $0x4f] sm:$0xff] }
 0x1f6   : > { %v3615_v32 = vld [vmem:[#allocation9 + $0x50] sm:$0xff]  ;;  %v867_v41 = vld [vmem:[#allocation9 + $0x39] sm:$0xff]  ;;  %v1040_v53 = vld [vmem:[#allocation9 + $0xc8] sm:$0xff] }
 0x1f7   : > { %2672 = vmatmul.msk.f32.gmra.mxu2 %vm705_vm15, %v3591_v24  ;;  %v868_v43 = vld [vmem:[#allocation9 + $0x51] sm:$0xff]  ;;  %v871_v51 = vld [vmem:[#allocation9 + $0x99] sm:$0xff]  ;;  %v1124_v54 = vld [vmem:[#allocation9 + $0xc9] sm:$0xff] }
 0x1f8   : > { %2680 = vmatmul.msk.f32.gmra.mxu3 %vm705_vm15, %v3593_v25  ;;  %v872_v52 = vld [vmem:[#allocation9 + $0xb1] sm:$0xff]  ;;  %v956_v55 = vld [vmem:[#allocation9 + $0xc7] sm:$0xff] }
 0x1fa   : > { %2669 = vmatmul.msk.f32.gmra.mxu0 %vm705_vm15, %v3595_v26 }
 0x1fb   : > { %2677 = vmatmul.msk.f32.gmra.mxu1 %vm705_vm15, %v3601_v27 }
 0x1ff   : > { %2673 = vmatmul.msk.f32.gmra.mxu2 %vm705_vm15, %v3607_v30 }
 0x200   : > { %2681 = vmatmul.msk.f32.gmra.mxu3 %vm705_vm15, %v3609_v31 }
 0x202   : > { %2670 = vmatmul.msk.f32.gmra.mxu0 %vm705_vm15, %v3615_v32 }
 0x203   : > { %2678 = vmatmul.msk.f32.gmra.mxu1 %vm705_vm15, %v3617_v33 }
 0x207   : > { %2674 = vmatmul.msk.f32.gmra.mxu2 %vm705_vm15, %v3623_v34 }
 0x208   : > { %2682 = vmatmul.msk.f32.gmra.mxu3 %vm705_vm15, %v3625_v35 }
 0x20a   : > { %2699 = vmatmul.msk.f32.vlgmr.msrb.gmra.mxu0 %vm705_vm15, %v725_v22 }
 0x20b   : > { %2707 = vmatmul.msk.f32.vlgmr.msrb.gmra.mxu1 %vm705_vm15, %v866_v37 }
 0x20f   : > { %2683 = vmatmul.msk.f32.vlgmr.msrb.gmra.mxu2 %vm705_vm15, %v865_v38 }
 0x210   : > { %2691 = vmatmul.msk.f32.vlgmr.msrb.gmra.mxu3 %vm705_vm15, %v715_v23 }
 0x212   : > { %2700 = vmatmul.msk.f32.gmra.mxu0 %vm705_vm15, %v3595_v26 }
 0x213   : > { %2708 = vmatmul.msk.f32.gmra.mxu1 %vm705_vm15, %v867_v41 }
 0x217   : > { %2684 = vmatmul.msk.f32.gmra.mxu2 %vm705_vm15, %v866_v37 }
 0x218   : > { %2692 = vmatmul.msk.f32.gmra.mxu3 %vm705_vm15, %v3601_v27 }
 0x21a   : > { %2701 = vmatmul.msk.f32.gmra.mxu0 %vm705_vm15, %v3615_v32 }
 0x21b   : > { %2709 = vmatmul.msk.f32.gmra.mxu1 %vm705_vm15, %v868_v43 }
 0x21f   : > { %2685 = vmatmul.msk.f32.gmra.mxu2 %vm705_vm15, %v867_v41 }
 0x220   : > { %2693 = vmatmul.msk.f32.gmra.mxu3 %vm705_vm15, %v3617_v33 }
 0x222   : > { %2702 = vmatmul.msk.f32.gmra.mxu0 %vm705_vm15, %v3581_v18 }
 0x223   : > { %2710 = vmatmul.msk.f32.gmra.mxu1 %vm705_vm15, %v869_v50 }
 0x227   : > { %2686 = vmatmul.msk.f32.gmra.mxu2 %vm705_vm15, %v868_v43 }
 0x228   : > { %2694 = vmatmul.msk.f32.gmra.mxu3 %vm705_vm15, %v3583_v19 }
 0x22a   : > { %2703 = vmatmul.msk.f32.gmra.mxu0 %vm705_vm15, %v3591_v24 }
 0x22b   : > { %2711 = vmatmul.msk.f32.gmra.mxu1 %vm705_vm15, %v870_v45 }
 0x22f   : > { %2687 = vmatmul.msk.f32.gmra.mxu2 %vm705_vm15, %v869_v50 }
 0x230   : > { %2695 = vmatmul.msk.f32.gmra.mxu3 %vm705_vm15, %v3593_v25 }
 0x232   : > { %2704 = vmatmul.msk.f32.gmra.mxu0 %vm705_vm15, %v3607_v30 }
 0x233   : > { %2712 = vmatmul.msk.f32.gmra.mxu1 %vm705_vm15, %v871_v51 }
 0x237   : > { %2688 = vmatmul.msk.f32.gmra.mxu2 %vm705_vm15, %v870_v45 }
 0x238   : > { %2696 = vmatmul.msk.f32.gmra.mxu3 %vm705_vm15, %v3609_v31 }
 0x23a   : > { %2705 = vmatmul.msk.f32.gmra.mxu0 %vm705_vm15, %v3623_v34 }
 0x23b   : > { %2713 = vmatmul.msk.f32.gmra.mxu1 %vm705_vm15, %v872_v52 }
 0x23f   : > { %2689 = vmatmul.msk.f32.gmra.mxu2 %vm705_vm15, %v871_v51 }
 0x240   : > { %2697 = vmatmul.msk.f32.gmra.mxu3 %vm705_vm15, %v3625_v35 }
 0x242   : > { %2706 = vmatmul.msk.f32.gmra.mxu0 %vm705_vm15, %v1040_v53 }
 0x243   : > { %2714 = vmatmul.msk.f32.gmra.mxu1 %vm705_vm15, %v1124_v54 }
 0x247   : > { %2690 = vmatmul.msk.f32.gmra.mxu2 %vm705_vm15, %v872_v52 }
 0x248   : > { %2698 = vmatmul.msk.f32.gmra.mxu3 %vm705_vm15, %v956_v55 }
 0x24a   : > { %2731 = vmatmul.msk.f32.vlgmr.msra.gmra.mxu0 %vm705_vm15, %v867_v41 }
 0x24b   : > { %2740 = vmatmul.msk.f32.vlgmr.msra.gmra.mxu1 %vm705_vm15, %v696_v14  ;;  %v1209_v14 = vld [vmem:[#allocation9 + $0xdf] sm:$0xff] }
 0x24f   : > { %2715 = vmatmul.msk.f32.vlgmr.msra.gmra.mxu2 %vm705_vm15, %v3601_v27 }
 0x250   : > { %2723 = vmatmul.msk.f32.vlgmr.msra.gmra.mxu3 %vm705_vm15, %v3595_v26 }
 0x252   : > { %2732 = vmatmul.msk.f32.gmra.mxu0 %vm705_vm15, %v868_v43 }
 0x253   : > { %2741 = vmatmul.msk.f32.gmra.mxu1 %vm705_vm15, %v697_v16 }
 0x257   : > { %2716 = vmatmul.msk.f32.gmra.mxu2 %vm705_vm15, %v3617_v33 }
 0x258   : > { %2724 = vmatmul.msk.f32.gmra.mxu3 %vm705_vm15, %v3615_v32 }
 0x25a   : > { %2733 = vmatmul.msk.f32.gmra.mxu0 %vm705_vm15, %v869_v50 }
 0x25b   : > { %2742 = vmatmul.msk.f32.gmra.mxu1 %vm705_vm15, %v698_v17 }
 0x25f   : > { %2717 = vmatmul.msk.f32.gmra.mxu2 %vm705_vm15, %v3583_v19 }
 0x260   : > { %2725 = vmatmul.msk.f32.gmra.mxu3 %vm705_vm15, %v3581_v18 }
 0x261   : > { %v776_v56 = vpop.f32.mrf.mxu0  ;;  %v841_v59 = vpop.f32.mrf.mxu1 }
 0x262   : > { %v842_v60 = vadd.f32 %v841_v59, %v776_v56  ;;  %2734 = vmatmul.msk.f32.gmra.mxu0 %vm705_vm15, %v870_v45 }
 0x263   : > { %2743 = vmatmul.msk.f32.gmra.mxu1 %vm705_vm15, %v699_v3 }
 0x267   : > { %2718 = vmatmul.msk.f32.gmra.mxu2 %vm705_vm15, %v3593_v25 }
 0x268   : > { %2726 = vmatmul.msk.f32.gmra.mxu3 %vm705_vm15, %v3591_v24 }
 0x26a   : > { %2735 = vmatmul.msk.f32.gmra.mxu0 %vm705_vm15, %v871_v51 }
 0x26b   : > { %2744 = vmatmul.msk.f32.gmra.mxu1 %vm705_vm15, %v700_v4 }
 0x26f   : > { %2719 = vmatmul.msk.f32.gmra.mxu2 %vm705_vm15, %v3609_v31  ;;  %v779_v57 = vpop.f32.mrf.mxu0 }
 0x270   : > { %2727 = vmatmul.msk.f32.gmra.mxu3 %vm705_vm15, %v3607_v30  ;;  %v844_v61 = vpop.f32.mrf.mxu1 }
 0x271   : > { %v845_v62 = vadd.f32 %v844_v61, %v779_v57 }
 0x272   : > { %v788_v63 = vpop.f32.mrf.mxu2  ;;  %2736 = vmatmul.msk.f32.gmra.mxu0 %vm705_vm15, %v872_v52 }
 0x273   : > { %v853_v0 = vpop.f32.mrf.mxu3  ;;  %2745 = vmatmul.msk.f32.gmra.mxu1 %vm705_vm15, %v701_v10  ;;  %v1377_v10 = vld [vmem:[#allocation9 + $0xe1] sm:$0xff] }
 0x274   : > { %v3734_v58 = vadd.f32 %v853_v0, %v788_v63 }
 0x277   : > { %2720 = vmatmul.msk.f32.gmra.mxu2 %vm705_vm15, %v3625_v35  ;;  %v782_v1 = vpop.f32.mrf.mxu0 }
 0x278   : > { %2728 = vmatmul.msk.f32.gmra.mxu3 %vm705_vm15, %v3623_v34  ;;  %v847_v2 = vpop.f32.mrf.mxu1 }
 0x279   : > { %v848_v3 = vadd.f32 %v847_v2, %v782_v1 }
 0x27a   : > { %v791_v4 = vpop.f32.mrf.mxu2  ;;  %2737 = vmatmul.msk.f32.gmra.mxu0 %vm705_vm15, %v1124_v54 }
 0x27b   : > { %v856_v6 = vpop.f32.mrf.mxu3  ;;  %2746 = vmatmul.msk.f32.gmra.mxu1 %vm705_vm15, %v702_v15  ;;  %v1293_v15 = vld [vmem:[#allocation9 + $0xe0] sm:$0xff] }
 0x27c   : > { %v3744_v5 = vadd.f32 %v856_v6, %v791_v4 }
 0x27f   : > { %2721 = vmatmul.msk.f32.gmra.mxu2 %vm705_vm15, %v956_v55  ;;  %v785_v7 = vpop.f32.mrf.mxu0 }
 0x280   : > { %2729 = vmatmul.msk.f32.gmra.mxu3 %vm705_vm15, %v1040_v53  ;;  %v850_v9 = vpop.f32.mrf.mxu1 }
 0x281   : > { %v851_v11 = vadd.f32 %v850_v9, %v785_v7 }
 0x282   : > { %v794_v12 = vpop.f32.mrf.mxu2  ;;  %2738 = vmatmul.msk.f32.gmra.mxu0 %vm705_vm15, %v1377_v10 }
 0x283   : > { %v859_v13 = vpop.f32.mrf.mxu3  ;;  %2747 = vmatmul.msk.f32.gmra.mxu1 %vm705_vm15, %v703_v49 }
 0x284   : > { %v860_v8 = vadd.f32 %v859_v13, %v794_v12 }
 0x287   : > { %2722 = vmatmul.msk.f32.gmra.mxu2 %vm705_vm15, %v1209_v14  ;;  %v1085_v16 = vpop.f32.mrf.mxu0 }
 0x288   : > { %2730 = vmatmul.msk.f32.gmra.mxu3 %vm705_vm15, %v1293_v15  ;;  %v1169_v17 = vpop.f32.mrf.mxu1 }
 0x28a   : > { %v797_v18 = vpop.f32.mrf.mxu2 }
 0x28b   : > { %v862_v19 = vpop.f32.mrf.mxu3 }
 0x28c   : > { %v863_v20 = vadd.f32 %v862_v19, %v797_v18 }
 0x28f   : > { %v1088_v21 = vpop.f32.mrf.mxu0 }
 0x290   : > { %v1172_v22 = vpop.f32.mrf.mxu1 }
 0x292   : > { %v917_v23 = vpop.f32.mrf.mxu2 }
 0x293   : > { %v1001_v24 = vpop.f32.mrf.mxu3  ;;  %v941_v25 = vadd.f32 %v917_v23, %v842_v60 }
 0x295   : > { %v1025_v26 = vadd.f32 %v1001_v24, %v941_v25 }
 0x297   : > { %v1109_v27 = vadd.f32 %v1085_v16, %v1025_v26  ;;  %v1091_v28 = vpop.f32.mrf.mxu0 }
 0x298   : > { %v1175_v29 = vpop.f32.mrf.mxu1 }
 0x299   : > { %v1193_v30 = vadd.f32 %v1169_v17, %v1109_v27 }
 0x29a   : > { %v920_v31 = vpop.f32.mrf.mxu2 }
 0x29b   : > { %v1004_v32 = vpop.f32.mrf.mxu3  ;;  %v942_v33 = vadd.f32 %v920_v31, %v845_v62 }
 0x29d   : > { %v1026_v34 = vadd.f32 %v1004_v32, %v942_v33 }
 0x29f   : > { %v1110_v35 = vadd.f32 %v1088_v21, %v1026_v34  ;;  %v1094_v36 = vpop.f32.mrf.mxu0 }
 0x2a0   : > { %v1178_v37 = vpop.f32.mrf.mxu1 }
 0x2a1   : > { %v3754_v38 = vadd.f32 %v1172_v22, %v1110_v35 }
 0x2a2   : > { %v923_v39 = vpop.f32.mrf.mxu2 }
 0x2a3   : > { %v1007_v40 = vpop.f32.mrf.mxu3  ;;  %v943_v41 = vadd.f32 %v923_v39, %v848_v3 }
 0x2a5   : > { %v1027_v42 = vadd.f32 %v1007_v40, %v943_v41 }
 0x2a7   : > { %v1111_v43 = vadd.f32 %v1091_v28, %v1027_v42  ;;  %v1097_v46 = vpop.f32.mrf.mxu0 }
 0x2a8   : > { %v1181_v47 = vpop.f32.mrf.mxu1 }
 0x2a9   : > { %v3756_v48 = vadd.f32 %v1175_v29, %v1111_v43 }
 0x2aa   : > { %v926_v49 = vpop.f32.mrf.mxu2 }
 0x2ab   : > { %v1010_v50 = vpop.f32.mrf.mxu3  ;;  %v944_v44 = vadd.f32 %v926_v49, %v851_v11 }
 0x2ad   : > { %v1028_v45 = vadd.f32 %v1010_v50, %v944_v44 }
 0x2af   : > { %v1112_v51 = vadd.f32 %v1094_v36, %v1028_v45  ;;  %v1100_v52 = vpop.f32.mrf.mxu0 }
 0x2b0   : > { %v1184_v53 = vpop.f32.mrf.mxu1 }
 0x2b1   : > { %v3758_v54 = vadd.f32 %v1178_v37, %v1112_v51 }
 0x2b2   : > { %v929_v55 = vpop.f32.mrf.mxu2 }
 0x2b3   : > { %v1013_v56 = vpop.f32.mrf.mxu3  ;;  %v945_v59 = vadd.f32 %v929_v55, %v3734_v58 }
 0x2b5   : > { %v1029_v60 = vadd.f32 %v1013_v56, %v945_v59 }
 0x2b7   : > { %v1113_v57 = vadd.f32 %v1097_v46, %v1029_v60  ;;  %v1103_v61 = vpop.f32.mrf.mxu0 }
 0x2b8   : > { %v1187_v63 = vpop.f32.mrf.mxu1 }
 0x2b9   : > { %v3761_v62 = vadd.f32 %v1181_v47, %v1113_v57 }
 0x2ba   : > { %v932_v0 = vpop.f32.mrf.mxu2 }
 0x2bb   : > { %v1016_v1 = vpop.f32.mrf.mxu3  ;;  %v946_v2 = vadd.f32 %v932_v0, %v3744_v5 }
 0x2bd   : > { %v1030_v3 = vadd.f32 %v1016_v1, %v946_v2 }
 0x2bf   : > { %v1114_v4 = vadd.f32 %v1100_v52, %v1030_v3  ;;  %v1106_v6 = vpop.f32.mrf.mxu0 }
 0x2c0   : > { %v1190_v58 = vpop.f32.mrf.mxu1 }
 0x2c1   : > { %v3764_v7 = vadd.f32 %v1184_v53, %v1114_v4 }
 0x2c2   : > { %v935_v9 = vpop.f32.mrf.mxu2 }
 0x2c3   : > { %v1019_v10 = vpop.f32.mrf.mxu3  ;;  %v947_v11 = vadd.f32 %v935_v9, %v860_v8 }
 0x2c5   : > { %v1031_v12 = vadd.f32 %v1019_v10, %v947_v11 }
 0x2c7   : > { %v1115_v13 = vadd.f32 %v1103_v61, %v1031_v12  ;;  %v1422_v14 = vpop.f32.mrf.mxu0 }
 0x2c8   : > { %v1508_v5 = vpop.f32.mrf.mxu1 }
 0x2c9   : > { %v3767_v15 = vadd.f32 %v1187_v63, %v1115_v13  ;;  %1533 = vst.msk [vmem:[%s3769_s12] sm:$0xff] %vm1456_vm0, %v1508_v5 }
 0x2ca   : > { %v938_v16 = vpop.f32.mrf.mxu2 }
 0x2cb   : > { %v1022_v17 = vpop.f32.mrf.mxu3  ;;  %v948_v18 = vadd.f32 %v938_v16, %v863_v20 }
 0x2cd   : > { %v1032_v19 = vadd.f32 %v1022_v17, %v948_v18 }
 0x2cf   : > { %v1116_v8 = vadd.f32 %v1106_v6, %v1032_v19  ;;  %v1425_v21 = vpop.f32.mrf.mxu0 }
 0x2d0   : > { %v1511_v26 = vpop.f32.mrf.mxu1 }
 0x2d1   : > { %v3773_v22 = vadd.f32 %v1190_v58, %v1116_v8  ;;  %1534 = vst.msk [vmem:[%s3769_s12 + $0x8] sm:$0xff] %vm1456_vm0, %v1511_v26 }
 0x2d2   : > { %v1254_v23 = vpop.f32.mrf.mxu2 }
 0x2d3   : > { %v1338_v24 = vpop.f32.mrf.mxu3  ;;  %v1278_v25 = vadd.f32 %v1254_v23, %v1193_v30 }
 0x2d5   : > { %v1362_v20 = vadd.f32 %v1338_v24, %v1278_v25 }
 0x2d7   : > { %v1446_v27 = vadd.f32 %v1422_v14, %v1362_v20  ;;  %v1428_v28 = vpop.f32.mrf.mxu0 }
 0x2d8   : > { %v1514_v33 = vpop.f32.mrf.mxu1 }
 0x2d9   : > { %1457 = vst.msk [vmem:[%s3777_s13] sm:$0xff] %vm1456_vm0, %v1446_v27  ;;  %v1567_v34 = vmul.f32 %v1446_v27, %v1446_v27  ;;  %v1542_v36 = vsel %vm1456_vm0, %v1446_v27, 0.0 }
 0x2da   : > { %v1257_v29 = vpop.f32.mrf.mxu2  ;;  %1535 = vst.msk [vmem:[%s3769_s12 + $0x10] sm:$0xff] %vm1456_vm0, %v1514_v33 }
 0x2db   : > { %v1341_v31 = vpop.f32.mrf.mxu3  ;;  %v1279_v32 = vadd.f32 %v1257_v29, %v3754_v38  ;;  %v1575_v38 = vsel %vm1456_vm0, %v1567_v34, 0.0 }
 0x2dd   : > { %v1363_v30 = vadd.f32 %v1341_v31, %v1279_v32 }
 0x2df   : > { %v1447_v35 = vadd.f32 %v1425_v21, %v1363_v30  ;;  %v1431_v47 = vpop.f32.mrf.mxu0 }
 0x2e0   : > { %v1517_v49 = vpop.f32.mrf.mxu1 }
 0x2e1   : > { %1458 = vst.msk [vmem:[%s3777_s13 + $0x8] sm:$0xff] %vm1456_vm0, %v1447_v35  ;;  %v1543_v37 = vsel %vm1456_vm0, %v1447_v35, 0.0  ;;  %v1568_v39 = vmul.f32 %v1447_v35, %v1447_v35 }
 0x2e2   : > { %v1544_v40 = vadd.f32 %v1543_v37, %v1542_v36  ;;  %v1260_v41 = vpop.f32.mrf.mxu2  ;;  %1536 = vst.msk [vmem:[%s3769_s12 + $0x18] sm:$0xff] %vm1456_vm0, %v1517_v49 }
 0x2e3   : > { %v1344_v42 = vpop.f32.mrf.mxu3  ;;  %v1576_v43 = vsel %vm1456_vm0, %v1568_v39, 0.0  ;;  %v1280_v46 = vadd.f32 %v1260_v41, %v3756_v48 }
 0x2e4   : > { %v1577_v50 = vadd.f32 %v1576_v43, %v1575_v38 }
 0x2e5   : > { %v1364_v44 = vadd.f32 %v1344_v42, %v1280_v46 }
 0x2e7   : > { %v1448_v45 = vadd.f32 %v1428_v28, %v1364_v44  ;;  %v1434_v63 = vpop.f32.mrf.mxu0 }
 0x2e8   : > { %v1520_v60 = vpop.f32.mrf.mxu1 }
 0x2e9   : > { %1459 = vst.msk [vmem:[%s3777_s13 + $0x10] sm:$0xff] %vm1456_vm0, %v1448_v45  ;;  %v1545_v51 = vsel %vm1456_vm0, %v1448_v45, 0.0  ;;  %v1569_v52 = vmul.f32 %v1448_v45, %v1448_v45 }
 0x2ea   : > { %v1546_v53 = vadd.f32 %v1545_v51, %v1544_v40  ;;  %v1263_v55 = vpop.f32.mrf.mxu2  ;;  %1537 = vst.msk [vmem:[%s3769_s12 + $0x20] sm:$0xff] %vm1456_vm0, %v1520_v60 }
 0x2eb   : > { %v1347_v56 = vpop.f32.mrf.mxu3  ;;  %v1578_v59 = vsel %vm1456_vm0, %v1569_v52, 0.0  ;;  %v1281_v48 = vadd.f32 %v1263_v55, %v3758_v54 }
 0x2ec   : > { %v1579_v57 = vadd.f32 %v1578_v59, %v1577_v50 }
 0x2ed   : > { %v1365_v61 = vadd.f32 %v1347_v56, %v1281_v48 }
 0x2ef   : > { %v1449_v0 = vadd.f32 %v1431_v47, %v1365_v61  ;;  %v1437_v13 = vpop.f32.mrf.mxu0 }
 0x2f0   : > { %v1523_v10 = vpop.f32.mrf.mxu1 }
 0x2f1   : > { %1460 = vst.msk [vmem:[%s3777_s13 + $0x18] sm:$0xff] %vm1456_vm0, %v1449_v0  ;;  %v1547_v1 = vsel %vm1456_vm0, %v1449_v0, 0.0  ;;  %v1570_v2 = vmul.f32 %v1449_v0, %v1449_v0  ;;  %v1566_v0 = vld [vmem:[#allocation5] sm:$0x1] }
 0x2f2   : > { %v1548_v3 = vadd.f32 %v1547_v1, %v1546_v53  ;;  %v1266_v4 = vpop.f32.mrf.mxu2  ;;  %1538 = vst.msk [vmem:[%s3769_s12 + $0x28] sm:$0xff] %vm1456_vm0, %v1523_v10 }
 0x2f3   : > { %v1350_v6 = vpop.f32.mrf.mxu3  ;;  %v1580_v9 = vsel %vm1456_vm0, %v1570_v2, 0.0  ;;  %v1282_v54 = vadd.f32 %v1266_v4, %v3761_v62 }
 0x2f4   : > { %v1581_v11 = vadd.f32 %v1580_v9, %v1579_v57  ;;  %v1541_v57 = vld [vmem:[#allocation4] sm:$0x1] }
 0x2f5   : > { %v1366_v58 = vadd.f32 %v1350_v6, %v1282_v54 }
 0x2f7   : > { %v1450_v12 = vadd.f32 %v1434_v63, %v1366_v58  ;;  %v1440_v20 = vpop.f32.mrf.mxu0 }
 0x2f8   : > { %v1526_v8 = vpop.f32.mrf.mxu1 }
 0x2f9   : > { %1461 = vst.msk [vmem:[%s3777_s13 + $0x20] sm:$0xff] %vm1456_vm0, %v1450_v12  ;;  %v1549_v14 = vsel %vm1456_vm0, %v1450_v12, 0.0  ;;  %v1571_v16 = vmul.f32 %v1450_v12, %v1450_v12 }
 0x2fa   : > { %v1550_v17 = vadd.f32 %v1549_v14, %v1548_v3  ;;  %v1269_v18 = vpop.f32.mrf.mxu2  ;;  %1539 = vst.msk [vmem:[%s3769_s12 + $0x30] sm:$0xff] %vm1456_vm0, %v1526_v8 }
 0x2fb   : > { %v1353_v5 = vpop.f32.mrf.mxu3  ;;  %v1582_v19 = vsel %vm1456_vm0, %v1571_v16, 0.0  ;;  %v1283_v62 = vadd.f32 %v1269_v18, %v3764_v7 }
 0x2fc   : > { %v1583_v21 = vadd.f32 %v1582_v19, %v1581_v11 }
 0x2fd   : > { %v1367_v23 = vadd.f32 %v1353_v5, %v1283_v62 }
 0x2ff   : > { %v1451_v24 = vadd.f32 %v1437_v13, %v1367_v23  ;;  %v1443_v38 = vpop.f32.mrf.mxu0 }
 0x300   : > { %v1529_v32 = vpop.f32.mrf.mxu1 }
 0x301   : > { %1462 = vst.msk [vmem:[%s3777_s13 + $0x28] sm:$0xff] %vm1456_vm0, %v1451_v24  ;;  %v1551_v25 = vsel %vm1456_vm0, %v1451_v24, 0.0  ;;  %v1572_v26 = vmul.f32 %v1451_v24, %v1451_v24 }
 0x302   : > { %v1552_v27 = vadd.f32 %v1551_v25, %v1550_v17  ;;  %v1272_v28 = vpop.f32.mrf.mxu2  ;;  %1540 = vst.msk [vmem:[%s3769_s12 + $0x38] sm:$0xff] %vm1456_vm0, %v1529_v32 }
 0x303   : > { %v1356_v29 = vpop.f32.mrf.mxu3  ;;  %v1584_v31 = vsel %vm1456_vm0, %v1572_v26, 0.0  ;;  %v1284_v7 = vadd.f32 %v1272_v28, %v3767_v15 }
 0x304   : > { %v1585_v33 = vadd.f32 %v1584_v31, %v1583_v21 }
 0x305   : > { %v1368_v30 = vadd.f32 %v1356_v29, %v1284_v7 }
 0x307   : > { %v1452_v34 = vadd.f32 %v1440_v20, %v1368_v30 }
 0x309   : > { %1463 = vst.msk [vmem:[%s3777_s13 + $0x30] sm:$0xff] %vm1456_vm0, %v1452_v34  ;;  %v1553_v35 = vsel %vm1456_vm0, %v1452_v34, 0.0  ;;  %v1573_v36 = vmul.f32 %v1452_v34, %v1452_v34 }
 0x30a   : > { %v1554_v37 = vadd.f32 %v1553_v35, %v1552_v27  ;;  %v1275_v39 = vpop.f32.mrf.mxu2 }
 0x30b   : > { %v1359_v40 = vpop.f32.mrf.mxu3  ;;  %v1586_v41 = vsel %vm1456_vm0, %v1573_v36, 0.0  ;;  %v1285_v42 = vadd.f32 %v1275_v39, %v3773_v22 }
 0x30c   : > { %v1587_v15 = vadd.f32 %v1586_v41, %v1585_v33 }
 0x30d   : > { %v1369_v43 = vadd.f32 %v1359_v40, %v1285_v42 }
 0x30f   : > { %v1453_v46 = vadd.f32 %v1443_v38, %v1369_v43 }
 0x311   : > { %1464 = vst.msk [vmem:[%s3777_s13 + $0x38] sm:$0xff] %vm1456_vm0, %v1453_v46  ;;  %v1555_v47 = vsel %vm1456_vm0, %v1453_v46, 0.0  ;;  %v1574_v49 = vmul.f32 %v1453_v46, %v1453_v46 }
 0x312   : > { %v1556_v50 = vadd.f32 %v1555_v47, %v1554_v37 }
 0x313   : > { %v1588_v44 = vsel %vm1456_vm0, %v1574_v49, 0.0 }
 0x314   : > { %v1557_v45 = vrot.slane %v1556_v50, 4  ;;  %v1589_v51 = vadd.f32 %v1588_v44, %v1587_v15 }
 0x316   : > { %v1558_v52 = vadd.f32 %v1557_v45, %v1556_v50  ;;  %v1590_v53 = vrot.slane %v1589_v51, 4 }
 0x318   : > { %v1559_v55 = vrot.slane %v1558_v52, 2  ;;  %v1591_v56 = vadd.f32 %v1590_v53, %v1589_v51 }
 0x31a   : > { %v1560_v59 = vadd.f32 %v1559_v55, %v1558_v52  ;;  %v1592_v22 = vrot.slane %v1591_v56, 2 }
 0x31c   : > { %v1561_v48 = vrot.slane %v1560_v59, 1  ;;  %v1593_v60 = vadd.f32 %v1592_v22, %v1591_v56 }
 0x31e   : > { %v1562_v61 = vadd.f32 %v1561_v48, %v1560_v59  ;;  %v1594_v63 = vrot.slane %v1593_v60, 1 }
 0x320   : > { %v1563_v1 = vadd.f32 %v1562_v61, %v1541_v57  ;;  %v1595_v2 = vadd.f32 %v1594_v63, %v1593_v60  ;;  %1601 = sbr.rel (%p2748_p9) target bundleno = 843 (0x34b), region = 96 }
 0x322   : > { %1565 = vst.msk [vmem:[#allocation4] sm:$0x1] %vm1564_vm1, %v1563_v1  ;;  %v1596_v3 = vadd.f32 %v1595_v2, %v1566_v0 }
 0x324   : > { %1597 = vst.msk [vmem:[#allocation5] sm:$0x1] %vm1564_vm1, %v1596_v3 }
 0x325   : > { %v1608_v18 = vld [vmem:[%s4234_s7] sm:$0x1] }
 0x326   : > { %v1622_v8 = vld [vmem:[%s4235_s24] sm:$0x1] }
 0x329   : > { %v1602_v4 = vld [vmem:[#allocation4] sm:$0x1] }
 0x32a   : > { %v1603_v9 = vmul.f32 0.0078125, %v1602_v4 }
 0x32b   : > { %v1604_v6 = vld [vmem:[#allocation5] sm:$0x1] }
 0x32c   : > { %v1605_v54 = vmul.f32 0.0078125, %v1604_v6  ;;  %v1606_v10 = vmul.f32 %v1603_v9, %v1603_v9 }
 0x32e   : > { %v1607_v11 = vsub.f32 %v1605_v54, %v1606_v10 }
 0x330   : > { %v1609_v58 = vadd.f32 1e-05, %v1607_v11 }
 0x332   : > { %2985 = vrsqrt.f32 %v1609_v58  ;;  %vm1616_vm2 = vweird.f32 %v1609_v58 }
 0x338   : > { %v2986_v12 = vpop.eup %2985 }
 0x339   : > { %v1611_v13 = vmul.f32 %v2986_v12, %v1609_v58  ;;  %vm1617_vm3 = vweird.f32 %v2986_v12 }
 0x33a   : > { %vm1618_vm4 = vmor %vm1616_vm2, %vm1617_vm3 }
 0x33b   : > { %v1612_v14 = vmul.f32 %v2986_v12, %v1611_v13 }
 0x33d   : > { %v1613_v16 = vmul.f32 0.5, %v1612_v14 }
 0x33f   : > { %v1614_v17 = vsub.f32 1.5, %v1613_v16 }
 0x341   : > { %v1615_v5 = vmul.f32 %v2986_v12, %v1614_v17 }
 0x343   : > { %v1619_v19 = vsel %vm1618_vm4, %v2986_v12, %v1615_v5 }
 0x344   : > { %v1620_v62 = vmul.f32 %v1619_v19, %v1608_v18 }
 0x346   : > { %1621 = vst.msk [vmem:[#allocation4] sm:$0x1] %vm1564_vm1, %v1620_v62  ;;  %v1623_v21 = vmul.f32 %v1620_v62, %v1603_v9 }
 0x348   : > { %v1624_v23 = vsub.f32 %v1622_v8, %v1623_v21 }
 0x34a   : > { %1625 = vst.msk [vmem:[#allocation5] sm:$0x1] %vm1564_vm1, %v1624_v23 }
 0x34b PF: > { %p2749_p12 = scmp.ne.s32.totalorder %s3194_s20, 2 }
 0x34c   : > { %p2750_p13 = scmp.ne.s32.totalorder (!%p2749_p12), %s3190_s19, 0 }
 0x34d   : > { %1629 = sbr.rel (%p2749_p12) target bundleno = 1183 (0x49f), region = 100 }
 0x352   : > { %1633 = sbr.rel (%p2750_p13) target bundleno = 886 (0x376), region = 104 }
 0x357   : > { %vm1634_vm5 = vcmask 261120   ;;  %v3214_v24 = vmov 0.0  }
 0x358   : > { %1635 = vst.msk [vmem:[#allocation10] sm:$0xff] %vm1634_vm5, %v3214_v24 }
 0x359   : > { %1636 = vst.msk [vmem:[#allocation10 + $0x8] sm:$0xff] %vm1634_vm5, %v3214_v24 }
 0x35a   : > { %1637 = vst.msk [vmem:[#allocation10 + $0x10] sm:$0xff] %vm1634_vm5, %v3214_v24 }
 0x35b   : > { %1638 = vst.msk [vmem:[#allocation10 + $0x18] sm:$0xff] %vm1634_vm5, %v3214_v24 }
 0x35c   : > { %1639 = vst.msk [vmem:[#allocation10 + $0x20] sm:$0xff] %vm1634_vm5, %v3214_v24 }
 0x35d   : > { %1640 = vst.msk [vmem:[#allocation10 + $0x28] sm:$0xff] %vm1634_vm5, %v3214_v24 }
 0x35e   : > { %1641 = vst.msk [vmem:[#allocation10 + $0x30] sm:$0xff] %vm1634_vm5, %v3214_v24 }
 0x35f   : > { %1642 = vst.msk [vmem:[#allocation10 + $0x38] sm:$0xff] %vm1634_vm5, %v3214_v24 }
 0x360   : > { %1643 = vst.msk [vmem:[#allocation10 + $0x40] sm:$0xff] %vm1634_vm5, %v3214_v24 }
 0x361   : > { %1644 = vst.msk [vmem:[#allocation10 + $0x48] sm:$0xff] %vm1634_vm5, %v3214_v24 }
 0x362   : > { %1645 = vst.msk [vmem:[#allocation10 + $0x50] sm:$0xff] %vm1634_vm5, %v3214_v24 }
 0x363   : > { %1646 = vst.msk [vmem:[#allocation10 + $0x58] sm:$0xff] %vm1634_vm5, %v3214_v24 }
 0x364   : > { %1647 = vst.msk [vmem:[#allocation10 + $0x60] sm:$0xff] %vm1634_vm5, %v3214_v24 }
 0x365   : > { %1648 = vst.msk [vmem:[#allocation10 + $0x68] sm:$0xff] %vm1634_vm5, %v3214_v24 }
 0x366   : > { %1649 = vst.msk [vmem:[#allocation10 + $0x70] sm:$0xff] %vm1634_vm5, %v3214_v24 }
 0x367   : > { %1650 = vst.msk [vmem:[#allocation10 + $0x78] sm:$0xff] %vm1634_vm5, %v3214_v24 }
 0x368   : > { %1651 = vst.msk [vmem:[#allocation10 + $0x80] sm:$0xff] %vm1634_vm5, %v3214_v24 }
 0x369   : > { %1652 = vst.msk [vmem:[#allocation10 + $0x88] sm:$0xff] %vm1634_vm5, %v3214_v24 }
 0x36a   : > { %1653 = vst.msk [vmem:[#allocation10 + $0x90] sm:$0xff] %vm1634_vm5, %v3214_v24 }
 0x36b   : > { %1654 = vst.msk [vmem:[#allocation10 + $0x98] sm:$0xff] %vm1634_vm5, %v3214_v24 }
 0x36c   : > { %1655 = vst.msk [vmem:[#allocation10 + $0xa0] sm:$0xff] %vm1634_vm5, %v3214_v24 }
 0x36d   : > { %1656 = vst.msk [vmem:[#allocation10 + $0xa8] sm:$0xff] %vm1634_vm5, %v3214_v24 }
 0x36e   : > { %1657 = vst.msk [vmem:[#allocation10 + $0xb0] sm:$0xff] %vm1634_vm5, %v3214_v24 }
 0x36f   : > { %1658 = vst.msk [vmem:[#allocation10 + $0xb8] sm:$0xff] %vm1634_vm5, %v3214_v24 }
 0x370   : > { %1659 = vst.msk [vmem:[#allocation10 + $0xc0] sm:$0xff] %vm1634_vm5, %v3214_v24 }
 0x371   : > { %1660 = vst.msk [vmem:[#allocation10 + $0xc8] sm:$0xff] %vm1634_vm5, %v3214_v24 }
 0x372   : > { %1661 = vst.msk [vmem:[#allocation10 + $0xd0] sm:$0xff] %vm1634_vm5, %v3214_v24 }
 0x373   : > { %1662 = vst.msk [vmem:[#allocation10 + $0xd8] sm:$0xff] %vm1634_vm5, %v3214_v24 }
 0x374   : > { %1663 = vst.msk [vmem:[#allocation10 + $0xe0] sm:$0xff] %vm1634_vm5, %v3214_v24 }
 0x375   : > { %1664 = vst.msk [vmem:[#allocation10 + $0xe8] sm:$0xff] %vm1634_vm5, %v3214_v24 }
 0x376 PF: > { %v1741_v25 = vld [vmem:[#allocation16 + $0x38] sm:$0xff]  ;;  %v1740_v26 = vld [vmem:[#allocation16 + $0x30] sm:$0xff]  ;;  %s2751_s22 = sshll.u32 %s3190_s19, 6  ;;  %v1739_v20 = vld [vmem:[#allocation16 + $0x28] sm:$0xff]  ;;  %vm1708_vm6 = vcmask 261120   ;;  %s2475_s8 = scalar_lea.vmem [#allocation6], %s3190_s19 }
 0x377   : > { %2835 = vmatpush.msra.mxu1 %v1741_v25  ;;  %2836 = vmatpush.msra.mxu2 %v1741_v25  ;;  %v3874_v27 = vld [vmem:[#allocation4] ss:$0 sm:$0xff]  ;;  %s3878_s11 = scalar_lea.vmem [#allocation7], %s2751_s22  ;;  %v3881_v29 = vld [vmem:[#allocation5] ss:$0 sm:$0xff]  ;;  %v1738_v33 = vld [vmem:[#allocation16 + $0x20] sm:$0xff] }
 0x378   : > { %2837 = vmatpush.msra.mxu3 %v1741_v25  ;;  %v1668_v28 = vld [vmem:[%s3878_s11 + $0x8] sm:$0xff]  ;;  %1778 = vmatpush.msra.mxu0 %v1741_v25  ;;  %v1670_v7 = vld [vmem:[%s3878_s11 + $0x18] sm:$0xff]  ;;  %v1669_v37 = vld [vmem:[%s3878_s11 + $0x10] sm:$0xff]  ;;  %s4070_s2 = scalar_lea.vmem [#allocation8], %s2751_s22 }
 0x379   : > { %2838 = vmatpush.msra.mxu1 %v1740_v26  ;;  %2839 = vmatpush.msra.mxu2 %v1740_v26  ;;  %v1680_v31 = vmul.f32 %v3874_v27, %v1668_v28  ;;  %v1672_v32 = vld [vmem:[%s3878_s11 + $0x28] sm:$0xff]  ;;  %v1682_v30 = vmul.f32 %v3874_v27, %v1670_v7  ;;  %v1671_v39 = vld [vmem:[%s3878_s11 + $0x20] sm:$0xff]  ;;  %v1681_v38 = vmul.f32 %v3874_v27, %v1669_v37  ;;  %v1673_v49 = vld [vmem:[%s3878_s11 + $0x30] sm:$0xff] }
 0x37a   : > { %2840 = vmatpush.msra.mxu3 %v1740_v26  ;;  %v1684_v34 = vmul.f32 %v3874_v27, %v1672_v32  ;;  %1779 = vmatpush.msra.mxu0 %v1740_v26  ;;  %v1884_v36 = vld [vmem:[#allocation16 + $0x58] sm:$0xff]  ;;  %v1883_v46 = vld [vmem:[#allocation16 + $0x50] sm:$0xff]  ;;  %v1683_v47 = vmul.f32 %v3874_v27, %v1671_v39  ;;  %v1685_v53 = vmul.f32 %v3874_v27, %v1673_v49  ;;  %v1882_v56 = vld [vmem:[#allocation16 + $0x48] sm:$0xff] }
 0x37b   : > { %2841 = vmatpush.msra.mxu1 %v1739_v20  ;;  %2842 = vmatpush.msra.mxu2 %v1739_v20  ;;  %v1692_v35 = vadd.f32 %v3881_v29, %v1680_v31  ;;  %v1694_v40 = vadd.f32 %v3881_v29, %v1682_v30  ;;  %v1970_v42 = vld [vmem:[#allocation16 + $0x78] sm:$0xff]  ;;  %v1969_v45 = vld [vmem:[#allocation16 + $0x70] sm:$0xff]  ;;  %v1693_v51 = vadd.f32 %v3881_v29, %v1681_v38  ;;  %v1729_v59 = vld [vmem:[#allocation10 + $0x8] sm:$0xff] }
 0x37c   : > { %2843 = vmatpush.msra.mxu3 %v1739_v20  ;;  %v1696_v41 = vadd.f32 %v3881_v29, %v1684_v34  ;;  %v1728_v15 = vld [vmem:[#allocation16 + $0x18] sm:$0xff]  ;;  %1780 = vmatpush.msra.mxu0 %v1739_v20  ;;  %v1727_v52 = vld [vmem:[#allocation16 + $0x10] sm:$0xff]  ;;  %v1695_v55 = vadd.f32 %v3881_v29, %v1683_v47  ;;  %v1697_v48 = vadd.f32 %v3881_v29, %v1685_v53  ;;  %v1968_v60 = vld [vmem:[#allocation16 + $0x68] sm:$0xff] }
 0x37d   : > { %2844 = vmatpush.msra.mxu1 %v1738_v33  ;;  %2845 = vmatpush.msra.mxu2 %v1738_v33  ;;  %v1700_v43 = vmax.f32 %v1692_v35, 0.0  ;;  %v1702_v50 = vmax.f32 %v1694_v40, 0.0  ;;  %v1701_v22 = vmax.f32 %v1693_v51, 0.0  ;;  %v2056_v57 = vld [vmem:[#allocation16 + $0x98] sm:$0xff]  ;;  %v1667_v61 = vld [vmem:[%s3878_s11] sm:$0xff]  ;;  %v1881_v1 = vld [vmem:[#allocation16 + $0x40] sm:$0xff] }
 0x37e   : > { %2846 = vmatpush.msra.mxu3 %v1738_v33  ;;  %v1704_v44 = vmax.f32 %v1696_v41, 0.0  ;;  %1781 = vmatpush.msra.mxu0 %v1738_v33  ;;  %v1703_v63 = vmax.f32 %v1695_v55, 0.0  ;;  %v1726_v0 = vld [vmem:[#allocation16 + $0x8] sm:$0xff]  ;;  %v1679_v2 = vmul.f32 %v3874_v27, %v1667_v61  ;;  %v1705_v3 = vmax.f32 %v1697_v48, 0.0  ;;  %v1967_v4 = vld [vmem:[#allocation16 + $0x60] sm:$0xff]  ;;  %v2055_v6 = vld [vmem:[#allocation16 + $0x90] sm:$0xff] }
 0x37f   : > { %1921 = vmatpush.msrb.mxu2 %v1884_v36  ;;  %1710 = vst.msk [vmem:[#allocation10 + $0x38] sm:$0xff] %vm1708_vm6, %v1700_v43  ;;  %1843 = vmatpush.msrb.mxu1 %v1728_v15  ;;  %v1725_v9 = vld [vmem:[#allocation16] sm:$0xff]  ;;  %v2054_v10 = vld [vmem:[#allocation16 + $0x88] sm:$0xff]  ;;  %v2142_v58 = vld [vmem:[#allocation16 + $0xb8] sm:$0xff] }
 0x380   : > { %2007 = vmatpush.msrb.mxu3 %v1970_v42  ;;  %1712 = vst.msk [vmem:[#allocation10 + $0x68] sm:$0xff] %vm1708_vm6, %v1702_v50  ;;  %2752 = vmatmul.msk.f32.vlgmr.msra.gmra.mxu0 %vm1708_vm6, %v1729_v59  ;;  %v1691_v54 = vadd.f32 %v3881_v29, %v1679_v2  ;;  %v2229_v13 = vld [vmem:[#allocation16 + $0xd8] sm:$0xff]  ;;  %v2053_v17 = vld [vmem:[#allocation16 + $0x80] sm:$0xff]  ;;  %v2228_v19 = vld [vmem:[#allocation16 + $0xd0] sm:$0xff] }
 0x381   : > { %1922 = vmatpush.msrb.mxu2 %v1883_v46  ;;  %1714 = vst.msk [vmem:[#allocation10 + $0x98] sm:$0xff] %vm1708_vm6, %v1704_v44  ;;  %1844 = vmatpush.msrb.mxu1 %v1727_v52  ;;  %v2315_v16 = vld [vmem:[#allocation16 + $0xf8] sm:$0xff]  ;;  %v2314_v62 = vld [vmem:[#allocation16 + $0xf0] sm:$0xff]  ;;  %v1717_v20 = vld [vmem:[#allocation10 + $0x7] sm:$0xff] }
 0x382   : > { %2008 = vmatpush.msrb.mxu3 %v1969_v45  ;;  %1711 = vst.msk [vmem:[#allocation10 + $0x50] sm:$0xff] %vm1708_vm6, %v1701_v22  ;;  %2093 = vmatpush.msrb.mxu0 %v2056_v57  ;;  %v1699_v11 = vmax.f32 %v1691_v54, 0.0  ;;  %v2401_v5 = vld [vmem:[#allocation16 + $0x118] sm:$0xff]  ;;  %v2141_v8 = vld [vmem:[#allocation16 + $0xb0] sm:$0xff]  ;;  %v2227_v7 = vld [vmem:[#allocation16 + $0xc8] sm:$0xff] }
 0x383   : > { %1923 = vmatpush.msrb.mxu2 %v1882_v56  ;;  %1713 = vst.msk [vmem:[#allocation10 + $0x80] sm:$0xff] %vm1708_vm6, %v1703_v63  ;;  %1845 = vmatpush.msrb.mxu1 %v1726_v0  ;;  %v2400_v26 = vld [vmem:[#allocation16 + $0x110] sm:$0xff]  ;;  %v2313_v32 = vld [vmem:[#allocation16 + $0xe8] sm:$0xff]  ;;  %v2226_v42 = vld [vmem:[#allocation16 + $0xc0] sm:$0xff] }
 0x384   : > { %2009 = vmatpush.msrb.mxu3 %v1968_v60  ;;  %1715 = vst.msk [vmem:[#allocation10 + $0xb0] sm:$0xff] %vm1708_vm6, %v1705_v3  ;;  %2094 = vmatpush.msrb.mxu0 %v2055_v6  ;;  %v1872_v28 = vld [vmem:[#allocation10 + $0x9] sm:$0xff]  ;;  %v2312_v38 = vld [vmem:[#allocation16 + $0xe0] sm:$0xff] }
 0x385   : > { %1924 = vmatpush.msrb.mxu2 %v1881_v1  ;;  %1846 = vmatpush.msrb.mxu1 %v1725_v9  ;;  %1709 = vst.msk [vmem:[#allocation10 + $0x20] sm:$0xff] %vm1708_vm6, %v1699_v11  ;;  %v2140_v33 = vld [vmem:[#allocation16 + $0xa8] sm:$0xff]  ;;  %v2139_v43 = vld [vmem:[#allocation16 + $0xa0] sm:$0xff] }
 0x386   : > { %2010 = vmatpush.msrb.mxu3 %v1967_v4  ;;  %v3910_v12 = vld [vmem:[#allocation10 + $0x38] sm:$0xff]  ;;  %2095 = vmatpush.msrb.mxu0 %v2054_v10  ;;  %v2399_v35 = vld [vmem:[#allocation16 + $0x108] sm:$0xff]  ;;  %v2398_v46 = vld [vmem:[#allocation16 + $0x100] sm:$0xff] }
 0x387   : > { %2754 = vmatmul.msk.f32.vlgmr.msra.gmra.mxu1 %vm1708_vm6, %v3910_v12  ;;  %v3914_v14 = vld [vmem:[#allocation10 + $0x68] sm:$0xff]  ;;  %v1959_v34 = vld [vmem:[#allocation10 + $0x37] sm:$0xff]  ;;  %v2224_v63 = vld [vmem:[#allocation10 + $0xdf] sm:$0xff] }
 0x388   : > { %2756 = vmatmul.msk.f32.vlgmr.msra.gmra.mxu2 %vm1708_vm6, %v3914_v14  ;;  %v3919_v18 = vld [vmem:[#allocation10 + $0x98] sm:$0xff]  ;;  %2179 = vmatpush.msra.mxu1 %v2142_v58  ;;  %v1674_v36 = vld [vmem:[%s3878_s11 + $0x38] sm:$0xff] }
 0x389   : > { %2758 = vmatmul.msk.f32.vlgmr.msra.gmra.mxu3 %vm1708_vm6, %v3919_v18  ;;  %2266 = vmatpush.msra.mxu2 %v2229_v13  ;;  %v3923_v21 = vld [vmem:[#allocation10 + $0x50] sm:$0xff]  ;;  %v1686_v37 = vmul.f32 %v3874_v27, %v1674_v36  ;;  %v1874_v39 = vld [vmem:[#allocation10 + $0x39] sm:$0xff]  ;;  %v2396_v61 = vld [vmem:[#allocation10 + $0xe1] sm:$0xff] }
 0x38a   : > { %2352 = vmatpush.msra.mxu3 %v2315_v16  ;;  %2096 = vmatpush.msrb.mxu0 %v2053_v17  ;;  %v3925_v23 = vld [vmem:[#allocation10 + $0x80] sm:$0xff]  ;;  %v1960_v40 = vld [vmem:[#allocation10 + $0x4f] sm:$0xff]  ;;  %v1963_v44 = vld [vmem:[#allocation10 + $0x97] sm:$0xff] }
 0x38b   : > { %2267 = vmatpush.msra.mxu2 %v2228_v19  ;;  %2180 = vmatpush.msra.mxu1 %v2141_v8  ;;  %v3927_v24 = vld [vmem:[#allocation10 + $0xb0] sm:$0xff]  ;;  %v1698_v41 = vadd.f32 %v3881_v29, %v1686_v37  ;;  %v1961_v29 = vld [vmem:[#allocation10 + $0x67] sm:$0xff]  ;;  %v1962_v49 = vld [vmem:[#allocation10 + $0x7f] sm:$0xff] }
 0x38c   : > { %2438 = vmatpush.msra.mxu0 %v2401_v5  ;;  %2353 = vmatpush.msra.mxu3 %v2314_v62  ;;  %v1730_v25 = vld [vmem:[#allocation10 + $0x20] sm:$0xff]  ;;  %v1875_v27 = vld [vmem:[#allocation10 + $0x51] sm:$0xff]  ;;  %v1876_v47 = vld [vmem:[#allocation10 + $0x69] sm:$0xff] }
 0x38d   : > { %2753 = vmatmul.msk.f32.gmra.mxu0 %vm1708_vm6, %v1730_v25  ;;  %v1958_v31 = vld [vmem:[#allocation10 + $0x1f] sm:$0xff]  ;;  %2268 = vmatpush.msra.mxu2 %v2227_v7  ;;  %v1706_v15 = vmax.f32 %v1698_v41, 0.0  ;;  %v1964_v51 = vld [vmem:[#allocation10 + $0xaf] sm:$0xff] }
 0x38e   : > { %2439 = vmatpush.msra.mxu0 %v2400_v26  ;;  %2354 = vmatpush.msra.mxu3 %v2313_v32  ;;  %v1873_v30 = vld [vmem:[#allocation10 + $0x21] sm:$0xff]  ;;  %v1878_v45 = vld [vmem:[#allocation10 + $0x99] sm:$0xff]  ;;  %v1879_v53 = vld [vmem:[#allocation10 + $0xb1] sm:$0xff] }
 0x38f   : > { %2755 = vmatmul.msk.f32.gmra.mxu1 %vm1708_vm6, %v3923_v21  ;;  %2269 = vmatpush.msra.mxu2 %v2226_v42  ;;  %1716 = vst.msk [vmem:[#allocation10 + $0xc8] sm:$0xff] %vm1708_vm6, %v1706_v15  ;;  %v1877_v50 = vld [vmem:[#allocation10 + $0x81] sm:$0xff] }
 0x390   : > { %2757 = vmatmul.msk.f32.gmra.mxu2 %vm1708_vm6, %v3925_v23  ;;  %2181 = vmatpush.msra.mxu1 %v2140_v33  ;;  %v2310_v1 = vld [vmem:[#allocation10 + $0xe0] sm:$0xff] }
 0x391   : > { %2759 = vmatmul.msk.f32.gmra.mxu3 %vm1708_vm6, %v3927_v24  ;;  %2440 = vmatpush.msra.mxu0 %v2399_v35 }
 0x392   : > { %2355 = vmatpush.msra.mxu3 %v2312_v38  ;;  %2182 = vmatpush.msra.mxu1 %v2139_v43 }
 0x393   : > { %2441 = vmatpush.msra.mxu0 %v2398_v46 }
 0x395   : > { %2784 = vmatmul.msk.f32.vlgmr.msrb.gmra.mxu0 %vm1708_vm6, %v1730_v25 }
 0x396   : > { %v2051_v52 = vld [vmem:[#allocation10 + $0xc8] sm:$0xff] }
 0x397   : > { %2760 = vmatmul.msk.f32.vlgmr.msrb.gmra.mxu1 %vm1708_vm6, %v1717_v20  ;;  %v1965_v55 = vld [vmem:[#allocation10 + $0xc7] sm:$0xff] }
 0x398   : > { %2768 = vmatmul.msk.f32.vlgmr.msrb.gmra.mxu2 %vm1708_vm6, %v1872_v28  ;;  %v2137_v22 = vld [vmem:[#allocation10 + $0xc9] sm:$0xff] }
 0x399   : > { %2776 = vmatmul.msk.f32.vlgmr.msrb.gmra.mxu3 %vm1708_vm6, %v1958_v31 }
 0x39d   : > { %2785 = vmatmul.msk.f32.gmra.mxu0 %vm1708_vm6, %v3910_v12 }
 0x39f   : > { %2761 = vmatmul.msk.f32.gmra.mxu1 %vm1708_vm6, %v1958_v31 }
 0x3a0   : > { %2769 = vmatmul.msk.f32.gmra.mxu2 %vm1708_vm6, %v1873_v30 }
 0x3a1   : > { %2777 = vmatmul.msk.f32.gmra.mxu3 %vm1708_vm6, %v1959_v34 }
 0x3a5   : > { %2786 = vmatmul.msk.f32.gmra.mxu0 %vm1708_vm6, %v3923_v21 }
 0x3a7   : > { %2762 = vmatmul.msk.f32.gmra.mxu1 %vm1708_vm6, %v1959_v34 }
 0x3a8   : > { %2770 = vmatmul.msk.f32.gmra.mxu2 %vm1708_vm6, %v1874_v39 }
 0x3a9   : > { %2778 = vmatmul.msk.f32.gmra.mxu3 %vm1708_vm6, %v1960_v40 }
 0x3ad   : > { %2787 = vmatmul.msk.f32.gmra.mxu0 %vm1708_vm6, %v3914_v14 }
 0x3af   : > { %2763 = vmatmul.msk.f32.gmra.mxu1 %vm1708_vm6, %v1960_v40 }
 0x3b0   : > { %2771 = vmatmul.msk.f32.gmra.mxu2 %vm1708_vm6, %v1875_v27 }
 0x3b1   : > { %2779 = vmatmul.msk.f32.gmra.mxu3 %vm1708_vm6, %v1961_v29 }
 0x3b5   : > { %2788 = vmatmul.msk.f32.gmra.mxu0 %vm1708_vm6, %v3925_v23 }
 0x3b7   : > { %2764 = vmatmul.msk.f32.gmra.mxu1 %vm1708_vm6, %v1961_v29 }
 0x3b8   : > { %2772 = vmatmul.msk.f32.gmra.mxu2 %vm1708_vm6, %v1876_v47 }
 0x3b9   : > { %2780 = vmatmul.msk.f32.gmra.mxu3 %vm1708_vm6, %v1962_v49 }
 0x3bd   : > { %2789 = vmatmul.msk.f32.gmra.mxu0 %vm1708_vm6, %v3919_v18 }
 0x3bf   : > { %2765 = vmatmul.msk.f32.gmra.mxu1 %vm1708_vm6, %v1962_v49 }
 0x3c0   : > { %2773 = vmatmul.msk.f32.gmra.mxu2 %vm1708_vm6, %v1877_v50 }
 0x3c1   : > { %2781 = vmatmul.msk.f32.gmra.mxu3 %vm1708_vm6, %v1963_v44 }
 0x3c5   : > { %2790 = vmatmul.msk.f32.gmra.mxu0 %vm1708_vm6, %v3927_v24 }
 0x3c7   : > { %2766 = vmatmul.msk.f32.gmra.mxu1 %vm1708_vm6, %v1963_v44 }
 0x3c8   : > { %2774 = vmatmul.msk.f32.gmra.mxu2 %vm1708_vm6, %v1878_v45 }
 0x3c9   : > { %2782 = vmatmul.msk.f32.gmra.mxu3 %vm1708_vm6, %v1964_v51 }
 0x3cd   : > { %2791 = vmatmul.msk.f32.gmra.mxu0 %vm1708_vm6, %v2051_v52 }
 0x3cf   : > { %2767 = vmatmul.msk.f32.gmra.mxu1 %vm1708_vm6, %v1964_v51 }
 0x3d0   : > { %2775 = vmatmul.msk.f32.gmra.mxu2 %vm1708_vm6, %v1879_v53 }
 0x3d1   : > { %2783 = vmatmul.msk.f32.gmra.mxu3 %vm1708_vm6, %v1965_v55 }
 0x3d5   : > { %2816 = vmatmul.msk.f32.vlgmr.msra.gmra.mxu0 %vm1708_vm6, %v1874_v39 }
 0x3d7   : > { %2792 = vmatmul.msk.f32.vlgmr.msra.gmra.mxu1 %vm1708_vm6, %v1873_v30 }
 0x3d8   : > { %2800 = vmatmul.msk.f32.vlgmr.msra.gmra.mxu2 %vm1708_vm6, %v1959_v34 }
 0x3d9   : > { %2808 = vmatmul.msk.f32.vlgmr.msra.gmra.mxu3 %vm1708_vm6, %v3910_v12 }
 0x3dd   : > { %2817 = vmatmul.msk.f32.gmra.mxu0 %vm1708_vm6, %v1875_v27 }
 0x3df   : > { %2793 = vmatmul.msk.f32.gmra.mxu1 %vm1708_vm6, %v1874_v39 }
 0x3e0   : > { %2801 = vmatmul.msk.f32.gmra.mxu2 %vm1708_vm6, %v1960_v40 }
 0x3e1   : > { %2809 = vmatmul.msk.f32.gmra.mxu3 %vm1708_vm6, %v3923_v21 }
 0x3e5   : > { %2818 = vmatmul.msk.f32.gmra.mxu0 %vm1708_vm6, %v1876_v47 }
 0x3e7   : > { %2794 = vmatmul.msk.f32.gmra.mxu1 %vm1708_vm6, %v1875_v27 }
 0x3e8   : > { %2802 = vmatmul.msk.f32.gmra.mxu2 %vm1708_vm6, %v1961_v29 }
 0x3e9   : > { %2810 = vmatmul.msk.f32.gmra.mxu3 %vm1708_vm6, %v3914_v14 }
 0x3ed   : > { %2819 = vmatmul.msk.f32.gmra.mxu0 %vm1708_vm6, %v1877_v50 }
 0x3ef   : > { %2795 = vmatmul.msk.f32.gmra.mxu1 %vm1708_vm6, %v1876_v47 }
 0x3f0   : > { %2803 = vmatmul.msk.f32.gmra.mxu2 %vm1708_vm6, %v1962_v49 }
 0x3f1   : > { %2811 = vmatmul.msk.f32.gmra.mxu3 %vm1708_vm6, %v3925_v23 }
 0x3f5   : > { %2820 = vmatmul.msk.f32.gmra.mxu0 %vm1708_vm6, %v1878_v45 }
 0x3f7   : > { %2796 = vmatmul.msk.f32.gmra.mxu1 %vm1708_vm6, %v1877_v50 }
 0x3f8   : > { %2804 = vmatmul.msk.f32.gmra.mxu2 %vm1708_vm6, %v1963_v44 }
 0x3f9   : > { %2812 = vmatmul.msk.f32.gmra.mxu3 %vm1708_vm6, %v3919_v18 }
 0x3fd   : > { %2821 = vmatmul.msk.f32.gmra.mxu0 %vm1708_vm6, %v1879_v53  ;;  %v1783_v56 = vpop.f32.mrf.mxu0 }
 0x3ff   : > { %2797 = vmatmul.msk.f32.gmra.mxu1 %vm1708_vm6, %v1878_v45 }
 0x400   : > { %2805 = vmatmul.msk.f32.gmra.mxu2 %vm1708_vm6, %v1964_v51 }
 0x401   : > { %2813 = vmatmul.msk.f32.gmra.mxu3 %vm1708_vm6, %v3927_v24 }
 0x404   : > { %v4009_v59 = vpop.f32.mrf.mxu1 }
 0x405   : > { %2822 = vmatmul.msk.f32.gmra.mxu0 %vm1708_vm6, %v2137_v22 }
 0x407   : > { %2798 = vmatmul.msk.f32.gmra.mxu1 %vm1708_vm6, %v1879_v53 }
 0x408   : > { %2806 = vmatmul.msk.f32.gmra.mxu2 %vm1708_vm6, %v1965_v55 }
 0x409   : > { %2814 = vmatmul.msk.f32.gmra.mxu3 %vm1708_vm6, %v2051_v52  ;;  %v4066_v52 = vld [vmem:[%s2475_s8] ss:$0 sm:$0xff] }
 0x40a   : > { %v1786_v0 = vpop.f32.mrf.mxu0 }
 0x40b   : > { %v4015_v48 = vpop.f32.mrf.mxu2 }
 0x40c   : > { %v4017_v60 = vpop.f32.mrf.mxu1  ;;  %v4019_v57 = vpop.f32.mrf.mxu3 }
 0x40d   : > { %2823 = vmatmul.msk.f32.gmra.mxu0 %vm1708_vm6, %v2396_v61 }
 0x40f   : > { %2799 = vmatmul.msk.f32.gmra.mxu1 %vm1708_vm6, %v2137_v22  ;;  %v2489_v22 = vld [vmem:[%s4070_s2] sm:$0xff] }
 0x410   : > { %2807 = vmatmul.msk.f32.gmra.mxu2 %vm1708_vm6, %v2224_v63 }
 0x411   : > { %2815 = vmatmul.msk.f32.gmra.mxu3 %vm1708_vm6, %v2310_v1 }
 0x412   : > { %v2098_v6 = vpop.f32.mrf.mxu0 }
 0x413   : > { %v4025_v2 = vpop.f32.mrf.mxu2 }
 0x414   : > { %v4027_v3 = vpop.f32.mrf.mxu3  ;;  %v1848_v4 = vpop.f32.mrf.mxu1 }
 0x415   : > { %v1849_v35 = vadd.f32 %v1848_v4, %v1783_v56 }
 0x41a   : > { %v2101_v11 = vpop.f32.mrf.mxu0 }
 0x41b   : > { %v1926_v9 = vpop.f32.mrf.mxu2 }
 0x41c   : > { %v1851_v54 = vpop.f32.mrf.mxu1  ;;  %v2012_v10 = vpop.f32.mrf.mxu3  ;;  %v1950_v36 = vadd.f32 %v1926_v9, %v1849_v35 }
 0x41d   : > { %v1852_v15 = vadd.f32 %v1851_v54, %v1786_v0 }
 0x41e   : > { %v2036_v39 = vadd.f32 %v2012_v10, %v1950_v36 }
 0x420   : > { %v2122_v38 = vadd.f32 %v2098_v6, %v2036_v39 }
 0x422   : > { %v2104_v14 = vpop.f32.mrf.mxu0 }
 0x423   : > { %v1929_v58 = vpop.f32.mrf.mxu2 }
 0x424   : > { %v1854_v12 = vpop.f32.mrf.mxu1  ;;  %v2015_v13 = vpop.f32.mrf.mxu3  ;;  %v1951_v43 = vadd.f32 %v1929_v58, %v1852_v15 }
 0x425   : > { %v1855_v45 = vadd.f32 %v1854_v12, %v4009_v59 }
 0x426   : > { %v2037_v46 = vadd.f32 %v2015_v13, %v1951_v43 }
 0x428   : > { %v2123_v53 = vadd.f32 %v2101_v11, %v2037_v46 }
 0x42a   : > { %v4029_v5 = vpop.f32.mrf.mxu0 }
 0x42b   : > { %v1932_v16 = vpop.f32.mrf.mxu2 }
 0x42c   : > { %v1857_v17 = vpop.f32.mrf.mxu1  ;;  %v2018_v18 = vpop.f32.mrf.mxu3  ;;  %v1952_v55 = vadd.f32 %v1932_v16, %v1855_v45  ;;  %v2490_v16 = vld [vmem:[%s4070_s2 + $0x8] sm:$0xff] }
 0x42d   : > { %v1858_v10 = vadd.f32 %v1857_v17, %v4017_v60 }
 0x42e   : > { %v2038_v1 = vadd.f32 %v2018_v18, %v1952_v55 }
 0x430   : > { %v2124_v58 = vadd.f32 %v2104_v14, %v2038_v1 }
 0x432   : > { %v4033_v21 = vpop.f32.mrf.mxu0 }
 0x433   : > { %v1935_v19 = vpop.f32.mrf.mxu2 }
 0x434   : > { %v4031_v62 = vpop.f32.mrf.mxu1  ;;  %v2021_v8 = vpop.f32.mrf.mxu3  ;;  %v1953_v12 = vadd.f32 %v1935_v19, %v1858_v10 }
 0x435   : > { %v1861_v60 = vadd.f32 %v4031_v62, %v4015_v48 }
 0x436   : > { %v2039_v39 = vadd.f32 %v2021_v8, %v1953_v12 }
 0x438   : > { %v2125_v17 = vadd.f32 %v4029_v5, %v2039_v39 }
 0x43a   : > { %v4041_v26 = vpop.f32.mrf.mxu0 }
 0x43b   : > { %v4035_v23 = vpop.f32.mrf.mxu2 }
 0x43c   : > { %v4037_v24 = vpop.f32.mrf.mxu1  ;;  %v4039_v25 = vpop.f32.mrf.mxu3  ;;  %v1954_v19 = vadd.f32 %v4035_v23, %v1861_v60 }
 0x43d   : > { %v1864_v45 = vadd.f32 %v4037_v24, %v4025_v2 }
 0x442   : > { %v4049_v7 = vpop.f32.mrf.mxu0 }
 0x443   : > { %v4043_v20 = vpop.f32.mrf.mxu2 }
 0x444   : > { %v4045_v28 = vpop.f32.mrf.mxu1  ;;  %v4047_v31 = vpop.f32.mrf.mxu3 }
 0x44a   : > { %v4057_v34 = vpop.f32.mrf.mxu0 }
 0x44b   : > { %v4051_v32 = vpop.f32.mrf.mxu2 }
 0x44c   : > { %v4053_v33 = vpop.f32.mrf.mxu1  ;;  %v4055_v30 = vpop.f32.mrf.mxu3 }
 0x452   : > { %v2443_v42 = vpop.f32.mrf.mxu0 }
 0x453   : > { %v4059_v37 = vpop.f32.mrf.mxu2 }
 0x454   : > { %v4061_v40 = vpop.f32.mrf.mxu3  ;;  %v2184_v41 = vpop.f32.mrf.mxu1 }
 0x455   : > { %v2208_v27 = vadd.f32 %v2184_v41, %v2122_v38 }
 0x45a   : > { %v2446_v44 = vpop.f32.mrf.mxu0 }
 0x45b   : > { %v2271_v29 = vpop.f32.mrf.mxu2 }
 0x45c   : > { %v2295_v47 = vadd.f32 %v2271_v29, %v2208_v27  ;;  %v2187_v49 = vpop.f32.mrf.mxu1  ;;  %v2357_v50 = vpop.f32.mrf.mxu3  ;;  %v2491_v29 = vld [vmem:[%s4070_s2 + $0x10] sm:$0xff] }
 0x45d   : > { %v2209_v61 = vadd.f32 %v2187_v49, %v2123_v53  ;;  %v2040_v49 = vadd.f32 %v4039_v25, %v1954_v19  ;;  %v1955_v53 = vadd.f32 %v4043_v20, %v1864_v45 }
 0x45e   : > { %v2381_v51 = vadd.f32 %v2357_v50, %v2295_v47 }
 0x460   : > { %v2467_v56 = vadd.f32 %v2443_v42, %v2381_v51  ;;  %v2126_v51 = vadd.f32 %v4033_v21, %v2040_v49 }
 0x462   : > { %v2480_v63 = vmul.f32 %v4066_v52, %v2467_v56  ;;  %v2449_v54 = vpop.f32.mrf.mxu0  ;;  %v2492_v56 = vld [vmem:[%s4070_s2 + $0x18] sm:$0xff] }
 0x463   : > { %v2274_v0 = vpop.f32.mrf.mxu2 }
 0x464   : > { %v2497_v59 = vadd.f32 %v2489_v22, %v2480_v63  ;;  %v2296_v4 = vadd.f32 %v2274_v0, %v2209_v61  ;;  %v2190_v6 = vpop.f32.mrf.mxu1  ;;  %v2360_v9 = vpop.f32.mrf.mxu3  ;;  %v2041_v63 = vadd.f32 %v4047_v31, %v1955_v53 }
 0x465   : > { %v2210_v35 = vadd.f32 %v2190_v6, %v2124_v58 }
 0x466   : > { %2505 = vst.msk [vmem:[%s3430_s30] sm:$0xff] %vm1708_vm6, %v2497_v59  ;;  %v2382_v11 = vadd.f32 %v2360_v9, %v2296_v4  ;;  %v1867_v59 = vadd.f32 %v4045_v28, %v4019_v57  ;;  %v2127_v20 = vadd.f32 %v4041_v26, %v2041_v63  ;;  %v2493_v9 = vld [vmem:[%s4070_s2 + $0x20] sm:$0xff]  ;;  %v1870_v26 = vadd.f32 %v4053_v33, %v4027_v3 }
 0x468   : > { %v2468_v13 = vadd.f32 %v2446_v44, %v2382_v11  ;;  %v1956_v4 = vadd.f32 %v4051_v32, %v1867_v59 }
 0x46a   : > { %v2481_v36 = vmul.f32 %v4066_v52, %v2468_v13  ;;  %v2452_v43 = vpop.f32.mrf.mxu0  ;;  %v2042_v58 = vadd.f32 %v4055_v30, %v1956_v4 }
 0x46b   : > { %v2277_v18 = vpop.f32.mrf.mxu2 }
 0x46c   : > { %v2498_v41 = vadd.f32 %v2490_v16, %v2481_v36  ;;  %v2297_v42 = vadd.f32 %v2277_v18, %v2210_v35  ;;  %v2193_v15 = vpop.f32.mrf.mxu1  ;;  %v2363_v38 = vpop.f32.mrf.mxu3  ;;  %v2128_v16 = vadd.f32 %v4049_v7, %v2042_v58  ;;  %v1957_v35 = vadd.f32 %v4059_v37, %v1870_v26  ;;  %v2494_v18 = vld [vmem:[%s4070_s2 + $0x28] sm:$0xff] }
 0x46d   : > { %v2211_v8 = vadd.f32 %v2193_v15, %v2125_v17 }
 0x46e   : > { %2506 = vst.msk [vmem:[%s3430_s30 + $0x8] sm:$0xff] %vm1708_vm6, %v2498_v41  ;;  %v2383_v14 = vadd.f32 %v2363_v38, %v2297_v42  ;;  %v2043_v15 = vadd.f32 %v4061_v40, %v1957_v35 }
 0x470   : > { %v2469_v27 = vadd.f32 %v2449_v54, %v2383_v14  ;;  %v2129_v37 = vadd.f32 %v4057_v34, %v2043_v15  ;;  %v2495_v14 = vld [vmem:[%s4070_s2 + $0x30] sm:$0xff] }
 0x472   : > { %v2482_v46 = vmul.f32 %v4066_v52, %v2469_v27  ;;  %v2455_v23 = vpop.f32.mrf.mxu0 }
 0x473   : > { %v2280_v47 = vpop.f32.mrf.mxu2 }
 0x474   : > { %v2499_v50 = vadd.f32 %v2491_v29, %v2482_v46  ;;  %v2298_v44 = vadd.f32 %v2280_v47, %v2211_v8  ;;  %v2196_v48 = vpop.f32.mrf.mxu1  ;;  %v2366_v62 = vpop.f32.mrf.mxu3 }
 0x475   : > { %v2212_v25 = vadd.f32 %v2196_v48, %v2126_v51 }
 0x476   : > { %2507 = vst.msk [vmem:[%s3430_s30 + $0x10] sm:$0xff] %vm1708_vm6, %v2499_v50  ;;  %v2384_v5 = vadd.f32 %v2366_v62, %v2298_v44  ;;  %v2496_v50 = vld [vmem:[%s4070_s2 + $0x38] sm:$0xff] }
 0x478   : > { %v2470_v55 = vadd.f32 %v2452_v43, %v2384_v5 }
 0x47a   : > { %v2483_v22 = vmul.f32 %v4066_v52, %v2470_v55  ;;  %v2458_v54 = vpop.f32.mrf.mxu0 }
 0x47b   : > { %v2283_v61 = vpop.f32.mrf.mxu2 }
 0x47c   : > { %v2500_v0 = vadd.f32 %v2492_v56, %v2483_v22  ;;  %v2299_v2 = vadd.f32 %v2283_v61, %v2212_v25  ;;  %v2199_v24 = vpop.f32.mrf.mxu1  ;;  %v2369_v1 = vpop.f32.mrf.mxu3 }
 0x47d   : > { %v2213_v31 = vadd.f32 %v2199_v24, %v2127_v20 }
 0x47e   : > { %2508 = vst.msk [vmem:[%s3430_s30 + $0x18] sm:$0xff] %vm1708_vm6, %v2500_v0  ;;  %v2385_v21 = vadd.f32 %v2369_v1, %v2299_v2 }
 0x480   : > { %v2471_v6 = vadd.f32 %v2455_v23, %v2385_v21 }
 0x482   : > { %v2484_v10 = vmul.f32 %v4066_v52, %v2471_v6  ;;  %v2461_v42 = vpop.f32.mrf.mxu0 }
 0x483   : > { %v2286_v11 = vpop.f32.mrf.mxu2 }
 0x484   : > { %v2501_v12 = vadd.f32 %v2493_v9, %v2484_v10  ;;  %v2300_v57 = vadd.f32 %v2286_v11, %v2213_v31  ;;  %v2372_v28 = vpop.f32.mrf.mxu3  ;;  %v2202_v13 = vpop.f32.mrf.mxu1 }
 0x485   : > { %v2214_v39 = vadd.f32 %v2202_v13, %v2128_v16 }
 0x486   : > { %2509 = vst.msk [vmem:[%s3430_s30 + $0x20] sm:$0xff] %vm1708_vm6, %v2501_v12  ;;  %v2386_v32 = vadd.f32 %v2372_v28, %v2300_v57 }
 0x488   : > { %v2472_v36 = vadd.f32 %v2458_v54, %v2386_v32 }
 0x48a   : > { %v2485_v30 = vmul.f32 %v4066_v52, %v2472_v36  ;;  %v2464_v46 = vpop.f32.mrf.mxu0 }
 0x48b   : > { %v2289_v41 = vpop.f32.mrf.mxu2 }
 0x48c   : > { %v2502_v38 = vadd.f32 %v2494_v18, %v2485_v30  ;;  %v2301_v3 = vadd.f32 %v2289_v41, %v2214_v39  ;;  %v2375_v33 = vpop.f32.mrf.mxu3  ;;  %v2205_v43 = vpop.f32.mrf.mxu1 }
 0x48d   : > { %v2215_v17 = vadd.f32 %v2205_v43, %v2129_v37 }
 0x48e   : > { %2510 = vst.msk [vmem:[%s3430_s30 + $0x28] sm:$0xff] %vm1708_vm6, %v2502_v38  ;;  %v2387_v7 = vadd.f32 %v2375_v33, %v2301_v3 }
 0x490   : > { %v2473_v60 = vadd.f32 %v2461_v42, %v2387_v7 }
 0x492   : > { %v2486_v19 = vmul.f32 %v4066_v52, %v2473_v60 }
 0x493   : > { %v2292_v27 = vpop.f32.mrf.mxu2 }
 0x494   : > { %v2503_v29 = vadd.f32 %v2495_v14, %v2486_v19  ;;  %v2302_v40 = vadd.f32 %v2292_v27, %v2215_v17  ;;  %v2378_v8 = vpop.f32.mrf.mxu3 }
 0x496   : > { %2511 = vst.msk [vmem:[%s3430_s30 + $0x30] sm:$0xff] %vm1708_vm6, %v2503_v29  ;;  %v2388_v47 = vadd.f32 %v2378_v8, %v2302_v40 }
 0x498   : > { %v2474_v49 = vadd.f32 %v2464_v46, %v2388_v47 }
 0x49a   : > { %v2487_v44 = vmul.f32 %v4066_v52, %v2474_v49 }
 0x49c   : > { %v2504_v48 = vadd.f32 %v2496_v50, %v2487_v44 }
 0x49e   : > { %2512 = vst.msk [vmem:[%s3430_s30 + $0x38] sm:$0xff] %vm1708_vm6, %v2504_v48 }
 0x49f PF: > { %p2521_p0 = scmp.eq.s32.totalorder %s3194_s20, 2  ;;  %s2528_s4 = sshll.u32 %s3430_s30, 4  ;;  %s2529_s4 = int_to_ptr.vmem [resolvable:$true] %s2528_s4 }
 0x4a0   : > { %s4237_s12 = sld [smem:[#allocation36_spill]]  ;;  %s2514_s16 = scalar_lea.sflag [#allocation13], %s432_s21 }
 0x4a1   : > { %s4257_s19 = smov (!%p2521_p0, %s3190_s19), 0 }
 0x4a2   : > { %s2830_s9 = sshll.u32 %s4257_s19, 6 }
 0x4a6   : > { %s2527_s13 = scalar_lea.hbm %s4237_s12, %s2830_s9  ;;  %s3100_s19 = scalar_lea.hbm %s4237_s12, 128 }
 0x4a7   : > { %s2530_s29 = sshll.u32 %s2527_s13, 4  ;;  %s2531_s29 = int_to_ptr.hbm [resolvable:$true] %s2530_s29 }
 0x4a8   : > { %s3094_s7 = sshra.s32 %s2531_s29, 4  ;;  %s3095_s7 = int_to_ptr.hbm [resolvable:$true] %s3094_s7 }
 0x4a9   : > { %s3096_s10 = scalar_lea.hbm %s3095_s7, 64  ;;  %p3101_p11 = scmp.lt.s32.totalorder %s3095_s7, %s4237_s12 }
 0x4aa   : > { %p3097_p2 = scmp.ne.s32.totalorder %s3095_s7, %s3096_s10  ;;  %p3102_p7 = scmp.lt.s32.totalorder %s3100_s19, %s3096_s10 }
 0x4ac   : > { %p3098_p3 = pnand %p3097_p2, %p3342_p6  ;;  %p3103_p1 = por %p3102_p7, %p3101_p11 }
 0x4ae   : > { %p3099_p5 = pneg %p3098_p3 }
 0x4b0   : > { %p3104_p4 = pnand %p3103_p1, %p3099_p5 }
 0x4b2   : > { %3107 = shalt.err (!%p3104_p4)
}
 0x4b3   : > { %s3215_s21 = smov 128   ;;  %s3216_s22 = smov 8  }
 0x4b4   : > { %2857 = dma.vmem_to_hbm [thread:$0]  (%p3342_p6), %s2529_s4, 1024, %s2531_s29, %s2514_s16, %s3215_s21, %s3215_s21, %s3216_s22  }
 0x4b5 PF: > { %s4238_s11 = sld [smem:[#allocation21_spill]]  ;;  %p2879_p8 = scmp.ge.s32.totalorder %s3206_s23, 2 }
 0x4b7   : > { %p2871_p9 = pnand %p2879_p8, %p3348_p10 }
 0x4b9   : > { %p2872_p12 = pneg %p2871_p9 }
 0x4bb   : > { %s2545_s2 = sand.u32 1, %s4238_s11  }
 0x4bc   : > { %s2546_s9 = scalar_lea.sflag [#allocation13], %s2545_s2 }
 0x4bd   : > { %3161 = dma.done.wait (%p2872_p12), %s2546_s9, 1024  }
 0x4be   : > { %3163 = vsyncadd (%p2872_p12), %s2546_s9, 4294966272  ;;  %s27_s23 = sadd.s32 1, %s3206_s23   ;;  %s4240_s19 = sld [smem:[#allocation22_spill]] }
 0x4bf   : > { %p24_p13 = scmp.ge.s32.totalorder %s27_s23, 8   ;;  %s4241_s20 = sld [smem:[#allocation23_spill]] }
 0x4c0   : > { %s4242_s21 = sld [smem:[#allocation26_spill]]  ;;  %s4244_s13 = smov %s3170_s14 }
 0x4c1   : > { %s4243_s22 = sld [smem:[#allocation27_spill]]  ;;  %s4245_s14 = smov %s3174_s15 }
 0x4c2   : > { %s4246_s15 = smov %s3402_s5  ;;  %s4247_s16 = smov %s3182_s17 }
 0x4c3   : > { %s4248_s17 = smov %s3186_s18  ;;  %s4249_s18 = smov %s3399_s6 }
 0x4c4   :  { %26 = sbr.rel (!%p24_p13) target bundleno = 20 (0x14), region = 171 }
 0x4c9   :  { %2552 = vsyncpa [#allocation12], 1 }
 0x4ca   :  { %2554 = vsyncpa [#allocation12 + $0x1], 1 }
 0x4cb   :  { %2555 = vsyncpa [#allocation15], 1 }
 0x4cc   :  { %2556 = vsyncpa [#allocation13], 1 }
 0x4cd   :  { %2558 = vsyncpa [#allocation13 + $0x1], 1 }

</bundles_post_ra>
